<compile_context>
chip_gen: v7x
topology: tpu7x:2x2x1
jax: 0.10.0
libtpu: 0.0.40
codegen_flags: <defaults>
</compile_context>

<pallas_src>
import functools

import jax
import jax.numpy as jnp
from jax import lax
from jax.experimental import pallas as pl
from jax.experimental.pallas import tpu as pltpu


def _cp_kernel(x_ref, em2t_ref, e_ref, e2_ref, q_ref, sse_ref, *, n_valid):
    """One N-tile in natural (rows, latent_dim) layout.

    x_ref   : (TN, D)     flattened-input tile
    em2t_ref: (D, K)      -2 * codebook^T         (grid-resident)
    e_ref   : (K, D)      codebook                (grid-resident)
    e2_ref  : (1, K)      per-code squared norms  (grid-resident)
    q_ref   : (TN, D)     nearest-code rows (output, natural layout)
    sse_ref : (1, 8, 128) per-tile partial SSEs (lane 0 = sse_q, lane 1 = sse_s)
    """
    x = x_ref[...]                          # (TN, D) f32
    em2t = em2t_ref[...]                    # (D, K)  f32
    e = e_ref[...]                          # (K, D)  f32
    e2 = e2_ref[...]                        # (1, K)  f32
    tn = x.shape[0]
    k = e.shape[0]

    # Ranking-equivalent distances: ||x - e||^2 - ||x||^2 = ||e||^2 - 2<x, e>.
    # Per-row constant ||x||^2 is dropped (argmin-invariant); the -2 is folded
    # into em2t in the wrapper -> a single MXU matmul + one (TN, K) add.
    dist = jnp.dot(x, em2t, preferred_element_type=jnp.float32) + e2      # (TN,K)

    col = lax.broadcasted_iota(jnp.int32, (tn, k), 1)
    inf = jnp.float32(jnp.inf)

    def argmin_rows(dm):
        # torch.argmin tie-break: lowest index.
        mv = jnp.min(dm, axis=1, keepdims=True)                           # (TN,1)
        return jnp.min(jnp.where(dm == mv, col, k), axis=1, keepdims=True)

    idx1 = argmin_rows(dist)                       # nearest code        (TN,1)
    eq1 = col == idx1
    d2 = jnp.where(eq1, inf, dist)
    idx2 = argmin_rows(d2)                         # 2nd nearest
    d3 = jnp.where(col == idx2, inf, d2)
    idx3 = argmin_rows(d3)                         # 3rd nearest (torch.sort[:,2])
    eq3 = col == idx3

    # Gather the selected code vectors with one-hot matmuls (MXU is idle here),
    # so both SSEs below are exact ||code - x||^2 (no expanded-form cancellation).
    oh1 = eq1.astype(jnp.float32)                  # (TN, K)
    oh3 = eq3.astype(jnp.float32)
    quant = jnp.dot(oh1, e, preferred_element_type=jnp.float32)           # (TN,D)
    squant = jnp.dot(oh3, e, preferred_element_type=jnp.float32)          # (TN,D)
    q_ref[...] = quant

    # Row-validity mask for the padded tail, applied AFTER the D-axis reduce.
    i = pl.program_id(0)
    row = lax.broadcasted_iota(jnp.int32, (tn, 1), 0) + i * tn
    valid = (row < n_valid).astype(jnp.float32)                           # (TN,1)

    dq = quant - x
    ds = squant - x
    sse_q = jnp.sum(jnp.sum(dq * dq, axis=1, keepdims=True) * valid,
                    axis=0, keepdims=True)                                # (1,1)
    sse_s = jnp.sum(jnp.sum(ds * ds, axis=1, keepdims=True) * valid,
                    axis=0, keepdims=True)                                # (1,1)

    # Single aligned (8, 128) partial-SSE tile: lane 0 = sse_q, lane 1 = sse_s.
    lane = lax.broadcasted_iota(jnp.int32, (8, 128), 1)
    sse_ref[0] = (jnp.where(lane == 0, sse_q, 0.0)
                  + jnp.where(lane == 1, sse_s, 0.0))


def cp_forward(ip_score, codebook, commitment_cost=0.25, block_n=1024):
    """Equivalent of CP.forward (eval mode): returns (cp_score, k_loss, feature_EMA)."""
    bs, kpts, seq = ip_score.shape
    K, D = codebook.shape
    total = bs * kpts * seq
    assert total % D == 0, "element count must be divisible by latent_dim"
    assert K >= 3, "codebook_size must be >= 3 (3rd-nearest lookup)"
    N = total // D

    # Natural layout end-to-end: no wrapper transposes (reshape is free).
    flat = ip_score.astype(jnp.float32).reshape(N, D)                     # (N, D)
    e = codebook.astype(jnp.float32)                                      # (K, D)
    em2t = (-2.0 * e).T                                                   # (D, K)
    e2 = jnp.sum(e * e, axis=1)[None, :]                                  # (1, K)

    # Lane-aligned tile over N.  Cap so the ~10 live (TN, K) f32 temporaries of
    # the argmin chain stay within a few MiB (vreg / VMEM pressure on v7x/v5e),
    # and so the "parallel" axis has >= 2 steps for megacore when possible.
    n128 = ((N + 127) // 128) * 128
    TN = max(128, (min(block_n, n128) // 128) * 128)
    while TN > 128 and K * TN > (1 << 18):            # ~1 MiB per (TN, K) f32 temp
        TN = max(128, ((TN // 2) // 128) * 128)
    if n128 >= 256:
        TN = min(TN, ((n128 + 255) // 256) * 128)     # ceil(n128/2) rounded to 128
    G = pl.cdiv(N, TN)
    Np = G * TN
    if Np != N:
        flat = jnp.pad(flat, ((0, Np - N), (0, 0)))

    q, sse = pl.pallas_call(
        functools.partial(_cp_kernel, n_valid=N),
        grid=(G,),
        in_specs=[pl.BlockSpec((TN, D), lambda i: (i, 0)),
                  pl.BlockSpec((D, K), lambda i: (0, 0)),
                  pl.BlockSpec((K, D), lambda i: (0, 0)),
                  pl.BlockSpec((1, K), lambda i: (0, 0))],
        out_specs=(pl.BlockSpec((TN, D), lambda i: (i, 0)),
                   pl.BlockSpec((1, 8, 128), lambda i: (i, 0, 0))),
        out_shape=(jax.ShapeDtypeStruct((Np, D), jnp.float32),
                   jax.ShapeDtypeStruct((G, 8, 128), jnp.float32)),
        compiler_params=pltpu.CompilerParams(
            dimension_semantics=("parallel",),
            vmem_limit_bytes=48 * 1024 * 1024),
    )(flat, em2t, e, e2)

    sse_q = jnp.sum(sse[:, 0, 0])
    sse_s = jnp.sum(sse[:, 0, 1])
    # k_loss = commitment_cost * mse(quantized, inputs)
    k_loss = commitment_cost * sse_q / (N * D)
    # cp_score = 1 - ||feature_EMA - IP_score||_F / ||sec_EMA - IP_score||_F
    # (straight-through estimator: feature_EMA == quantized numerically)
    cp_score = 1.0 - jnp.sqrt(sse_q) / jnp.sqrt(sse_s)
    feature_ema = q[:N].reshape(bs, kpts, seq)
    return cp_score, k_loss, feature_ema


def _reference(ip_score, codebook, commitment_cost=0.25):
    """Pure-JAX reference mirroring the PyTorch EMA/CP eval-mode forward."""
    bs, kpts, seq = ip_score.shape
    K, D = codebook.shape
    flat = ip_score.reshape(-1, D)
    dist = (jnp.sum(flat ** 2, axis=1, keepdims=True)
            + jnp.sum(codebook ** 2, axis=1)[None, :]
            - 2.0 * flat @ codebook.T)
    order = jnp.argsort(dist, axis=1)
    q = codebook[order[:, 0]]
    s = codebook[order[:, 2]]
    sse_q = jnp.sum((q - flat) ** 2)
    sse_s = jnp.sum((s - flat) ** 2)
    k_loss = commitment_cost * sse_q / flat.size
    cp = 1.0 - jnp.sqrt(sse_q) / jnp.sqrt(sse_s)
    return cp, k_loss, q.reshape(bs, kpts, seq)


if __name__ == "__main__":
    # opt-like hyperparameters (synthetic, deterministic)
    codebook_size = 16     # opt.codebook_size (num_embeddings)
    latent_dim = 8         # opt.latent_dim (embedding_dim); here == seq
    bs, kpts, seq = 2, 6, 8  # kpts divisible by 3 (reshape to (bs, kpts//3, 3, seq))

    key = jax.random.PRNGKey(0)
    k_emb, k_in = jax.random.split(key)
    # nn.Embedding weight .normal_()  -> deterministic standard normal
    codebook = jax.random.normal(k_emb, (codebook_size, latent_dim), jnp.float32)
    ip_score = jax.random.normal(k_in, (bs, kpts, seq), jnp.float32)

    cp_score, k_loss, feature_ema = cp_forward(ip_score, codebook)
    jax.block_until_ready((cp_score, k_loss, feature_ema))

    # correctness check against pure-JAX reference
    cp_r, kl_r, fe_r = _reference(ip_score, codebook)
    assert jnp.allclose(cp_score, cp_r, rtol=1e-5, atol=1e-5), (cp_score, cp_r)
    assert jnp.allclose(k_loss, kl_r, rtol=1e-5, atol=1e-5), (k_loss, kl_r)
    assert jnp.allclose(feature_ema, fe_r, rtol=1e-5, atol=1e-5)

    # TODO(synk): EMA training-time buffer updates (_ema_cluster_size/_ema_w,
    # codebook rewrite), perplexity and encodings are stateful / training-only
    # outputs of EMA.forward and are not part of CP's eval forward.
    print("KERNEL_OK")
</pallas_src>

<mosaic_0001>
module attributes {stable_mosaic.version = 11 : i64} {
  func.func @_cp_kernel(%arg0: i32, %arg1: memref<128x8xf32, #tpu.memory_space<vmem>>, %arg2: memref<8x16xf32, #tpu.memory_space<vmem>>, %arg3: memref<16x8xf32, #tpu.memory_space<vmem>>, %arg4: memref<1x16xf32, #tpu.memory_space<vmem>>, %arg5: memref<128x8xf32, #tpu.memory_space<vmem>>, %arg6: memref<1x8x128xf32, #tpu.memory_space<vmem>>) attributes {dimension_semantics = [#tpu.dimension_semantics<parallel>], iteration_bounds = array<i64: 1>, scalar_prefetch = 0 : i64, scratch_operands = 0 : i64, tpu.core_type = #tpu.core_type<tc>, window_params = [{transform_indices = @transform_0, window_bounds = array<i64: 128, 8>}, {pipeline_mode = #tpu.pipeline_mode<synchronous>, transform_indices = @transform_1, window_bounds = array<i64: 8, 16>}, {pipeline_mode = #tpu.pipeline_mode<synchronous>, transform_indices = @transform_2, window_bounds = array<i64: 16, 8>}, {pipeline_mode = #tpu.pipeline_mode<synchronous>, transform_indices = @transform_3, window_bounds = array<i64: 1, 16>}, {transform_indices = @transform_4, window_bounds = array<i64: 128, 8>}, {transform_indices = @transform_5, window_bounds = array<i64: 1, 8, 128>}]} {
    %c0 = arith.constant 0 : index
    %c0_0 = arith.constant 0 : index
    %0 = vector.load %arg1[%c0, %c0_0] : memref<128x8xf32, #tpu.memory_space<vmem>>, vector<128x8xf32>
    %c0_1 = arith.constant 0 : index
    %c0_2 = arith.constant 0 : index
    %1 = vector.load %arg2[%c0_1, %c0_2] : memref<8x16xf32, #tpu.memory_space<vmem>>, vector<8x16xf32>
    %c0_3 = arith.constant 0 : index
    %c0_4 = arith.constant 0 : index
    %2 = vector.load %arg3[%c0_3, %c0_4] : memref<16x8xf32, #tpu.memory_space<vmem>>, vector<16x8xf32>
    %c0_5 = arith.constant 0 : index
    %c0_6 = arith.constant 0 : index
    %3 = vector.load %arg4[%c0_5, %c0_6] : memref<1x16xf32, #tpu.memory_space<vmem>>, vector<1x16xf32>
    %cst = arith.constant dense<0.000000e+00> : vector<128x16xf32>
    %4 = tpu.matmul %0, %1, %cst {dimension_numbers = #tpu.dot_dimension_numbers<[1], [0], [0], [1], [0, 0, 1, 1], [], []>} : vector<128x8xf32>, vector<8x16xf32>, vector<128x16xf32> -> vector<128x16xf32>
    %5 = vector.broadcast %3 : vector<1x16xf32> to vector<128x16xf32>
    %6 = arith.addf %4, %5 : vector<128x16xf32>
    %7 = tpu.iota {dimensions = array<i32: 1>} : vector<128x16xi32>
    %cst_7 = arith.constant dense<0x7F800000> : vector<128xf32>
    %8 = vector.multi_reduction <minimumf>, %6, %cst_7 [1] : vector<128x16xf32> to vector<128xf32>
    %9 = vector.shape_cast %8 : vector<128xf32> to vector<128x1xf32>
    %10 = vector.broadcast %9 : vector<128x1xf32> to vector<128x16xf32>
    %11 = arith.cmpf oeq, %6, %10 : vector<128x16xf32>
    %c16_i32 = arith.constant 16 : i32
    %12 = vector.broadcast %c16_i32 : i32 to vector<128x16xi32>
    %13 = arith.select %11, %7, %12 : vector<128x16xi1>, vector<128x16xi32>
    %cst_8 = arith.constant dense<2147483647> : vector<128xi32>
    %14 = vector.multi_reduction <minsi>, %13, %cst_8 [1] : vector<128x16xi32> to vector<128xi32>
    %15 = vector.shape_cast %14 : vector<128xi32> to vector<128x1xi32>
    %16 = vector.broadcast %15 : vector<128x1xi32> to vector<128x16xi32>
    %17 = arith.cmpi eq, %7, %16 : vector<128x16xi32>
    %cst_9 = arith.constant 0x7F800000 : f32
    %18 = vector.broadcast %cst_9 : f32 to vector<128x16xf32>
    %19 = arith.select %17, %18, %6 : vector<128x16xi1>, vector<128x16xf32>
    %cst_10 = arith.constant dense<0x7F800000> : vector<128xf32>
    %20 = vector.multi_reduction <minimumf>, %19, %cst_10 [1] : vector<128x16xf32> to vector<128xf32>
    %21 = vector.shape_cast %20 : vector<128xf32> to vector<128x1xf32>
    %22 = vector.broadcast %21 : vector<128x1xf32> to vector<128x16xf32>
    %23 = arith.cmpf oeq, %19, %22 : vector<128x16xf32>
    %c16_i32_11 = arith.constant 16 : i32
    %24 = vector.broadcast %c16_i32_11 : i32 to vector<128x16xi32>
    %25 = arith.select %23, %7, %24 : vector<128x16xi1>, vector<128x16xi32>
    %cst_12 = arith.constant dense<2147483647> : vector<128xi32>
    %26 = vector.multi_reduction <minsi>, %25, %cst_12 [1] : vector<128x16xi32> to vector<128xi32>
    %27 = vector.shape_cast %26 : vector<128xi32> to vector<128x1xi32>
    %28 = vector.broadcast %27 : vector<128x1xi32> to vector<128x16xi32>
    %29 = arith.cmpi eq, %7, %28 : vector<128x16xi32>
    %cst_13 = arith.constant 0x7F800000 : f32
    %30 = vector.broadcast %cst_13 : f32 to vector<128x16xf32>
    %31 = arith.select %29, %30, %19 : vector<128x16xi1>, vector<128x16xf32>
    %cst_14 = arith.constant dense<0x7F800000> : vector<128xf32>
    %32 = vector.multi_reduction <minimumf>, %31, %cst_14 [1] : vector<128x16xf32> to vector<128xf32>
    %33 = vector.shape_cast %32 : vector<128xf32> to vector<128x1xf32>
    %34 = vector.broadcast %33 : vector<128x1xf32> to vector<128x16xf32>
    %35 = arith.cmpf oeq, %31, %34 : vector<128x16xf32>
    %c16_i32_15 = arith.constant 16 : i32
    %36 = vector.broadcast %c16_i32_15 : i32 to vector<128x16xi32>
    %37 = arith.select %35, %7, %36 : vector<128x16xi1>, vector<128x16xi32>
    %cst_16 = arith.constant dense<2147483647> : vector<128xi32>
    %38 = vector.multi_reduction <minsi>, %37, %cst_16 [1] : vector<128x16xi32> to vector<128xi32>
    %39 = vector.shape_cast %38 : vector<128xi32> to vector<128x1xi32>
    %40 = vector.broadcast %39 : vector<128x1xi32> to vector<128x16xi32>
    %41 = arith.cmpi eq, %7, %40 : vector<128x16xi32>
    %42 = arith.extui %17 : vector<128x16xi1> to vector<128x16xi32>
    %43 = arith.sitofp %42 : vector<128x16xi32> to vector<128x16xf32>
    %44 = arith.extui %41 : vector<128x16xi1> to vector<128x16xi32>
    %45 = arith.sitofp %44 : vector<128x16xi32> to vector<128x16xf32>
    %cst_17 = arith.constant dense<0.000000e+00> : vector<128x8xf32>
    %46 = tpu.matmul %43, %2, %cst_17 {dimension_numbers = #tpu.dot_dimension_numbers<[1], [0], [0], [1], [0, 0, 1, 1], [], []>} : vector<128x16xf32>, vector<16x8xf32>, vector<128x8xf32> -> vector<128x8xf32>
    %cst_18 = arith.constant dense<0.000000e+00> : vector<128x8xf32>
    %47 = tpu.matmul %45, %2, %cst_18 {dimension_numbers = #tpu.dot_dimension_numbers<[1], [0], [0], [1], [0, 0, 1, 1], [], []>} : vector<128x16xf32>, vector<16x8xf32>, vector<128x8xf32> -> vector<128x8xf32>
    %c0_19 = arith.constant 0 : index
    %c0_20 = arith.constant 0 : index
    %48 = vector.load %arg5[%c0_19, %c0_20] : memref<128x8xf32, #tpu.memory_space<vmem>>, vector<128x8xf32>
    tpu.vector_store %arg5[%c0_19, %c0_20], %46 {strides = array<i32>} : memref<128x8xf32, #tpu.memory_space<vmem>>, vector<128x8xf32>,
    %49 = tpu.iota {dimensions = array<i32: 0>} : vector<128x1xi32>
    %c128_i32 = arith.constant 128 : i32
    %50 = arith.muli %arg0, %c128_i32 : i32
    %51 = vector.broadcast %50 : i32 to vector<128x1xi32>
    %52 = arith.addi %49, %51 : vector<128x1xi32>
    %c12_i32 = arith.constant 12 : i32
    %53 = vector.broadcast %c12_i32 : i32 to vector<128x1xi32>
    %54 = arith.cmpi slt, %52, %53 : vector<128x1xi32>
    %55 = arith.extui %54 : vector<128x1xi1> to vector<128x1xi32>
    %56 = arith.sitofp %55 : vector<128x1xi32> to vector<128x1xf32>
    %57 = arith.subf %46, %0 : vector<128x8xf32>
    %58 = arith.subf %47, %0 : vector<128x8xf32>
    %59 = arith.mulf %57, %57 : vector<128x8xf32>
    %cst_21 = arith.constant dense<0.000000e+00> : vector<128xf32>
    %60 = vector.multi_reduction <add>, %59, %cst_21 [1] : vector<128x8xf32> to vector<128xf32>
    %61 = vector.shape_cast %60 : vector<128xf32> to vector<128x1xf32>
    %62 = arith.mulf %61, %56 : vector<128x1xf32>
    %cst_22 = arith.constant dense<0.000000e+00> : vector<1xf32>
    %63 = vector.multi_reduction <add>, %62, %cst_22 [0] : vector<128x1xf32> to vector<1xf32>
    %64 = vector.shape_cast %63 : vector<1xf32> to vector<1x1xf32>
    %65 = arith.mulf %58, %58 : vector<128x8xf32>
    %cst_23 = arith.constant dense<0.000000e+00> : vector<128xf32>
    %66 = vector.multi_reduction <add>, %65, %cst_23 [1] : vector<128x8xf32> to vector<128xf32>
    %67 = vector.shape_cast %66 : vector<128xf32> to vector<128x1xf32>
    %68 = arith.mulf %67, %56 : vector<128x1xf32>
    %cst_24 = arith.constant dense<0.000000e+00> : vector<1xf32>
    %69 = vector.multi_reduction <add>, %68, %cst_24 [0] : vector<128x1xf32> to vector<1xf32>
    %70 = vector.shape_cast %69 : vector<1xf32> to vector<1x1xf32>
    %71 = tpu.iota {dimensions = array<i32: 1>} : vector<8x128xi32>
    %c0_i32 = arith.constant 0 : i32
    %72 = vector.broadcast %c0_i32 : i32 to vector<8x128xi32>
    %73 = arith.cmpi eq, %71, %72 : vector<8x128xi32>
    %cst_25 = arith.constant 0.000000e+00 : f32
    %74 = vector.shape_cast %64 : vector<1x1xf32> to vector<1x1xf32>
    %75 = vector.broadcast %74 : vector<1x1xf32> to vector<8x128xf32>
    %76 = vector.broadcast %cst_25 : f32 to vector<8x128xf32>
    %77 = arith.select %73, %75, %76 : vector<8x128xi1>, vector<8x128xf32>
    %c1_i32 = arith.constant 1 : i32
    %78 = vector.broadcast %c1_i32 : i32 to vector<8x128xi32>
    %79 = arith.cmpi eq, %71, %78 : vector<8x128xi32>
    %cst_26 = arith.constant 0.000000e+00 : f32
    %80 = vector.shape_cast %70 : vector<1x1xf32> to vector<1x1xf32>
    %81 = vector.broadcast %80 : vector<1x1xf32> to vector<8x128xf32>
    %82 = vector.broadcast %cst_26 : f32 to vector<8x128xf32>
    %83 = arith.select %79, %81, %82 : vector<8x128xi1>, vector<8x128xf32>
    %84 = arith.addf %77, %83 : vector<8x128xf32>
    %c0_27 = arith.constant 0 : index
    %c0_28 = arith.constant 0 : index
    %c0_29 = arith.constant 0 : index
    %85 = vector.load %arg6[%c0_27, %c0_28, %c0_29] : memref<1x8x128xf32, #tpu.memory_space<vmem>>, vector<1x8x128xf32>
    %86 = vector.shape_cast %85 : vector<1x8x128xf32> to vector<8x128xf32>
    %87 = vector.shape_cast %84 : vector<8x128xf32> to vector<1x8x128xf32>
    tpu.vector_store %arg6[%c0_27, %c0_28, %c0_29], %87 {strides = array<i32>} : memref<1x8x128xf32, #tpu.memory_space<vmem>>, vector<1x8x128xf32>,
    return
  }
  func.func @transform_0(%arg0: i32) -> (i32, i32) {
    %c0_i32 = arith.constant 0 : i32
    %c0_i32_0 = arith.constant 0 : i32
    return %arg0, %c0_i32 : i32, i32
  }
  func.func @transform_1(%arg0: i32) -> (i32, i32) {
    %c0_i32 = arith.constant 0 : i32
    %c0_i32_0 = arith.constant 0 : i32
    %c0_i32_1 = arith.constant 0 : i32
    return %c0_i32, %c0_i32_0 : i32, i32
  }
  func.func @transform_2(%arg0: i32) -> (i32, i32) {
    %c0_i32 = arith.constant 0 : i32
    %c0_i32_0 = arith.constant 0 : i32
    %c0_i32_1 = arith.constant 0 : i32
    return %c0_i32, %c0_i32_0 : i32, i32
  }
  func.func @transform_3(%arg0: i32) -> (i32, i32) {
    %c0_i32 = arith.constant 0 : i32
    %c0_i32_0 = arith.constant 0 : i32
    %c0_i32_1 = arith.constant 0 : i32
    return %c0_i32, %c0_i32_0 : i32, i32
  }
  func.func @transform_4(%arg0: i32) -> (i32, i32) {
    %c0_i32 = arith.constant 0 : i32
    %c0_i32_0 = arith.constant 0 : i32
    return %arg0, %c0_i32 : i32, i32
  }
  func.func @transform_5(%arg0: i32) -> (i32, i32, i32) {
    %c0_i32 = arith.constant 0 : i32
    %c0_i32_0 = arith.constant 0 : i32
    %c0_i32_1 = arith.constant 0 : i32
    return %arg0, %c0_i32, %c0_i32_0 : i32, i32, i32
  }
}

</mosaic_0001>

<bundles_post_ra>
// kernel: tpu_custom_call.1
= control target key start
LH: loop header
LB: loop body
LE: loop exit
PB: predicated region body
PF: predicated region fallthrough
CT: control target
= control target key end

     0   :  { %vm46_vm0 = vcmask 64512   ;;  %s3794_s0 = inlined_call_operand.vmem [shape: f32[128,8], index: 0, kind: input, shape index: {}]   ;;  %s3795_s1 = inlined_call_operand.vmem [shape: f32[8,16], index: 1, kind: input, shape index: {}]   ;;  %s3796_s2 = inlined_call_operand.vmem [shape: f32[16,8], index: 2, kind: input, shape index: {}]   ;;  %s3797_s3 = inlined_call_operand.vmem [shape: f32[1,16], index: 3, kind: input, shape index: {}]   ;;  %s3798_s4 = inlined_call_operand.vmem [shape: f32[128,8], index: 4, kind: output, shape index: {0}]   ;;  %s3799_s5 = inlined_call_operand.hbm [shape: f32[1,8,128], index: 5, kind: output, shape index: {1}]  }
   0x1   :  { %v36_v0 = vld [vmem:[%s3795_s1] sm:$0xff]  ;;  %v21_v2 = vld [vmem:[%s3794_s0 + $0x8] sm:$0xff]  ;;  %v22_v3 = vld [vmem:[%s3794_s0 + $0x10] sm:$0xff] }
   0x2   :  { %v20_v1 = vld [vmem:[%s3794_s0] sm:$0xff]  ;;  %2225 = vmatprep.subr.mxu0 %v36_v0  ;;  %2315 = vmatprep.subr.mxu1 %v36_v0  ;;  %v29_v5 = vld [vmem:[%s3794_s0 + $0x48] sm:$0xff]  ;;  %v30_v6 = vld [vmem:[%s3794_s0 + $0x50] sm:$0xff] }
   0x3   :  { %2227 = vmatprep.mubr.msk.f32.mxu0 %vm46_vm0, %v20_v1  ;;  %2226 = vmatpush3.msra.mxu0 %v36_v0  ;;  %v28_v4 = vld [vmem:[%s3794_s0 + $0x40] sm:$0xff]  ;;  %v23_v7 = vld [vmem:[%s3794_s0 + $0x18] sm:$0xff] }
   0x4   :  { %2228 = vmatmul.mubr.msk.f32.vlgmr.msra.gmra.mrb[0].mxu0 %vm46_vm0, %v21_v2  ;;  %2316 = vmatpush3.msra.mxu1 %v36_v0  ;;  %v24_v8 = vld [vmem:[%s3794_s0 + $0x20] sm:$0xff] }
   0x5   :  { %2230 = vmatprep.mubr.msk.f32.mxu0 %vm46_vm0, %v22_v3  ;;  %2239 = vmatprep.mubr.msk.f32.mxu1 %vm46_vm0, %v28_v4 }
   0x6   :  { %2240 = vmatmul.mubr.msk.f32.vlgmr.msra.gmra.mrb[0].mxu1 %vm46_vm0, %v29_v5 }
   0x7   :  { %11 = vsyncpa [#allocation3], 0  ;;  %2242 = vmatprep.mubr.msk.f32.mxu1 %vm46_vm0, %v30_v6  ;;  %v31_v9 = vld [vmem:[%s3794_s0 + $0x58] sm:$0xff]  ;;  %v32_v10 = vld [vmem:[%s3794_s0 + $0x60] sm:$0xff]  ;;  %vm242_vm1 = vcmask 130048   ;;  %v3800_v2 = vlaneseq }
   0x8   :  { %2231 = vmatmul.mubr.msk.f32.gmra.mrb[2].mxu0 %vm46_vm0, %v23_v7  ;;  %v25_v11 = vld [vmem:[%s3794_s0 + $0x28] sm:$0xff]  ;;  %v26_v12 = vld [vmem:[%s3794_s0 + $0x30] sm:$0xff]  ;;  %v27_v15 = vld [vmem:[%s3794_s0 + $0x38] sm:$0xff] }
   0x9   :  { %2233 = vmatprep.mubr.msk.f32.mxu0 %vm46_vm0, %v24_v8  ;;  %v33_v13 = vld [vmem:[%s3794_s0 + $0x68] sm:$0xff]  ;;  %v34_v14 = vld [vmem:[%s3794_s0 + $0x70] sm:$0xff]  ;;  %v35_v16 = vld [vmem:[%s3794_s0 + $0x78] sm:$0xff]  ;;  %v2526_v3 = vand.u32 127, %v3800_v2 }
   0xa   :  { %2243 = vmatmul.mubr.msk.f32.gmra.mrb[2].mxu1 %vm46_vm0, %v31_v9  ;;  %v2090_v17 = vld [vmem:[%s3797_s3] ss:$0 sm:$0xff] }
   0xb   :  { %2245 = vmatprep.mubr.msk.f32.mxu1 %vm46_vm0, %v32_v10 }
   0xc   :  { %2234 = vmatmul.mubr.msk.f32.gmra.mrb[4].mxu0 %vm46_vm0, %v25_v11 }
   0xd   :  { %2236 = vmatprep.mubr.msk.f32.mxu0 %vm46_vm0, %v26_v12 }
   0xe   :  { %2246 = vmatmul.mubr.msk.f32.gmra.mrb[4].mxu1 %vm46_vm0, %v33_v13 }
   0xf   :  { %2248 = vmatprep.mubr.msk.f32.mxu1 %vm46_vm0, %v34_v14 }
  0x10   :  { %2237 = vmatmul.mubr.msk.f32.gmra.mrb[6].mxu0 %vm46_vm0, %v27_v15 }
  0x12   :  { %2249 = vmatmul.mubr.msk.f32.gmra.mrb[6].mxu1 %vm46_vm0, %v35_v16 }
  0xd7   :  { %v2229_v18 = vpop.f32.mrb[0].mxu0 }
  0xd8   :  { %v161_v19 = vpop.f32.mrb[1].mxu0  ;;  %v2463_v23 = vadd.f32 %v2229_v18, %v2090_v17 }
  0xd9   :  { %v2461_v20 = vadd.f32 %v2090_v17, %v161_v19  ;;  %v2241_v21 = vpop.f32.mrb[0].mxu1 }
  0xda   :  { %v201_v22 = vpop.f32.mrb[1].mxu1  ;;  %v246_v33 = vsel %vm242_vm1, %v2463_v23, inf  ;;  %v2493_v50 = vadd.f32 %v2241_v21, %v2090_v17 }
  0xdb   :  { %v2232_v24 = vpop.f32.mrb[2].mxu0  ;;  %v243_v25 = vsel %vm242_vm1, %v2461_v20, inf  ;;  %v2487_v45 = vadd.f32 %v2090_v17, %v201_v22 }
  0xdc   :  { %v171_v26 = vpop.f32.mrb[3].mxu0  ;;  %244 = vmin.xlane.f32.xlu0 %v243_v25  ;;  %v2469_v30 = vadd.f32 %v2232_v24, %v2090_v17  ;;  %v270_v56 = vsel %vm242_vm1, %v2493_v50, inf }
  0xdd   :  { %v2467_v27 = vadd.f32 %v2090_v17, %v171_v26  ;;  %v2244_v28 = vpop.f32.mrb[2].mxu1  ;;  %v267_v53 = vsel %vm242_vm1, %v2487_v45, inf }
  0xde   :  { %v211_v29 = vpop.f32.mrb[3].mxu1  ;;  %v252_v40 = vsel %vm242_vm1, %v2469_v30, inf  ;;  %v2501_v54 = vadd.f32 %v2244_v28, %v2090_v17 }
  0xdf   :  { %v2235_v31 = vpop.f32.mrb[4].mxu0  ;;  %v249_v32 = vsel %vm242_vm1, %v2467_v27, inf  ;;  %v2495_v51 = vadd.f32 %v2090_v17, %v211_v29 }
  0xe0   :  { %v181_v34 = vpop.f32.mrb[5].mxu0  ;;  %250 = vmin.xlane.f32.xlu1 %v249_v32  ;;  %247 = vmin.xlane.f32.xlu0 %v246_v33  ;;  %v2475_v35 = vadd.f32 %v2235_v31, %v2090_v17  ;;  %v276_v60 = vsel %vm242_vm1, %v2501_v54, inf }
  0xe1   :  { %v2477_v36 = vadd.f32 %v2090_v17, %v181_v34  ;;  %v2247_v37 = vpop.f32.mrb[4].mxu1  ;;  %v273_v57 = vsel %vm242_vm1, %v2495_v51, inf }
  0xe2   :  { %v221_v38 = vpop.f32.mrb[5].mxu1  ;;  %v258_v46 = vsel %vm242_vm1, %v2475_v35, inf  ;;  %v2509_v58 = vadd.f32 %v2247_v37, %v2090_v17 }
  0xe3   :  { %v2238_v39 = vpop.f32.mrb[6].mxu0  ;;  %v255_v41 = vsel %vm242_vm1, %v2477_v36, inf  ;;  %v2503_v55 = vadd.f32 %v2090_v17, %v221_v38 }
  0xe4   :  { %v191_v42 = vpop.f32.mrb[7].mxu0  ;;  %253 = vmin.xlane.f32.xlu1 %v252_v40  ;;  %256 = vmin.xlane.f32.xlu0 %v255_v41  ;;  %v2483_v43 = vadd.f32 %v2238_v39, %v2090_v17  ;;  %v282_v63 = vsel %vm242_vm1, %v2509_v58, inf }
  0xe5   :  { %v2485_v44 = vadd.f32 %v2090_v17, %v191_v42  ;;  %v2250_v47 = vpop.f32.mrb[6].mxu1  ;;  %v279_v61 = vsel %vm242_vm1, %v2503_v55, inf }
  0xe6   :  { %v231_v48 = vpop.f32.mrb[7].mxu1  ;;  %v264_v52 = vsel %vm242_vm1, %v2483_v43, inf  ;;  %v2517_v62 = vadd.f32 %v2250_v47, %v2090_v17 }
  0xe7   :  { %v261_v49 = vsel %vm242_vm1, %v2485_v44, inf  ;;  %v2511_v59 = vadd.f32 %v2090_v17, %v231_v48 }
  0xe8   :  { %259 = vmin.xlane.f32.xlu1 %v258_v46  ;;  %262 = vmin.xlane.f32.xlu0 %v261_v49  ;;  %v288_v1 = vsel %vm242_vm1, %v2517_v62, inf }
  0xe9   :  { %v285_v0 = vsel %vm242_vm1, %v2511_v59, inf }
  0xec   :  { %265 = vmin.xlane.f32.xlu1 %v264_v52  ;;  %268 = vmin.xlane.f32.xlu0 %v267_v53 }
  0xf0   :  { %271 = vmin.xlane.f32.xlu1 %v270_v56  ;;  %274 = vmin.xlane.f32.xlu0 %v273_v57 }
  0xf4   :  { %277 = vmin.xlane.f32.xlu1 %v276_v60  ;;  %280 = vmin.xlane.f32.xlu0 %v279_v61 }
  0xf8   :  { %283 = vmin.xlane.f32.xlu1 %v282_v63  ;;  %286 = vmin.xlane.f32.xlu0 %v285_v0 }
  0xfc   :  { %289 = vmin.xlane.f32.xlu1 %v288_v1 }
 0x169   :  { %v245_v4 = vpop.xlane.xlu0 %244 }
 0x16a   :  { %vm291_vm2 = vcmp.eq.f32.partialorder %v2461_v20, %v245_v4 }
 0x16b   :  { %v307_v5 = vsel %vm291_vm2, %v2526_v3, 16 }
 0x16c   :  { %v2531_v6 = vsel %vm242_vm1, %v307_v5, 2147483647 }
 0x16d   :  { %v251_v7 = vpop.xlane.xlu1 %250  ;;  %v248_v8 = vpop.xlane.xlu0 %247  ;;  %v325_v9 = vshra.s32 %v2531_v6, 16 }
 0x16e   :  { %vm293_vm3 = vcmp.eq.f32.partialorder %v2467_v27, %v251_v7  ;;  %vm292_vm4 = vcmp.eq.f32.partialorder %v2463_v23, %v248_v8 }
 0x16f   :  { %v309_v10 = vsel %vm293_vm3, %v2526_v3, 16  ;;  %v308_v11 = vsel %vm292_vm4, %v2526_v3, 16  ;;  %v2538_v12 = vcvt.s32.f32 %v325_v9 }
 0x170   :  { %v2541_v13 = vsel %vm242_vm1, %v309_v10, 2147483647  ;;  %v2544_v14 = vsel %vm242_vm1, %v308_v11, 2147483647 }
 0x171   :  { %v254_v15 = vpop.xlane.xlu1 %253  ;;  %328 = vmin.xlane.f32.xlu0 %v2538_v12  ;;  %v257_v16 = vpop.xlane.xlu0 %256  ;;  %v355_v17 = vshra.s32 %v2541_v13, 16  ;;  %v340_v18 = vshra.s32 %v2544_v14, 16 }
 0x172   :  { %vm294_vm5 = vcmp.eq.f32.partialorder %v2469_v30, %v254_v15  ;;  %vm295_vm6 = vcmp.eq.f32.partialorder %v2477_v36, %v257_v16 }
 0x173   :  { %v310_v19 = vsel %vm294_vm5, %v2526_v3, 16  ;;  %v311_v21 = vsel %vm295_vm6, %v2526_v3, 16  ;;  %v2553_v22 = vcvt.s32.f32 %v355_v17  ;;  %v2555_v24 = vcvt.s32.f32 %v340_v18 }
 0x174   :  { %v2558_v25 = vsel %vm242_vm1, %v310_v19, 2147483647  ;;  %v2561_v26 = vsel %vm242_vm1, %v311_v21, 2147483647 }
 0x175   :  { %v260_v28 = vpop.xlane.xlu1 %259  ;;  %358 = vmin.xlane.f32.xlu0 %v2553_v22  ;;  %343 = vmin.xlane.f32.xlu1 %v2555_v24  ;;  %v263_v29 = vpop.xlane.xlu0 %262  ;;  %v370_v31 = vshra.s32 %v2558_v25, 16  ;;  %v385_v32 = vshra.s32 %v2561_v26, 16 }
 0x176   :  { %vm296_vm7 = vcmp.eq.f32.partialorder %v2475_v35, %v260_v28  ;;  %vm297_vm8 = vcmp.eq.f32.partialorder %v2485_v44, %v263_v29 }
 0x177   :  { %v312_v33 = vsel %vm296_vm7, %v2526_v3, 16  ;;  %v313_v34 = vsel %vm297_vm8, %v2526_v3, 16  ;;  %v2571_v37 = vcvt.s32.f32 %v370_v31  ;;  %v2573_v38 = vcvt.s32.f32 %v385_v32 }
 0x178   :  { %v2576_v39 = vsel %vm242_vm1, %v312_v33, 2147483647  ;;  %v2579_v40 = vsel %vm242_vm1, %v313_v34, 2147483647 }
 0x179   :  { %v266_v41 = vpop.xlane.xlu1 %265  ;;  %373 = vmin.xlane.f32.xlu1 %v2571_v37  ;;  %388 = vmin.xlane.f32.xlu0 %v2573_v38  ;;  %v269_v42 = vpop.xlane.xlu0 %268  ;;  %v400_v46 = vshra.s32 %v2576_v39, 16  ;;  %v415_v47 = vshra.s32 %v2579_v40, 16 }
 0x17a   :  { %vm298_vm9 = vcmp.eq.f32.partialorder %v2483_v43, %v266_v41  ;;  %vm299_vm10 = vcmp.eq.f32.partialorder %v2487_v45, %v269_v42 }
 0x17b   :  { %v314_v48 = vsel %vm298_vm9, %v2526_v3, 16  ;;  %v315_v49 = vsel %vm299_vm10, %v2526_v3, 16  ;;  %v2589_v52 = vcvt.s32.f32 %v400_v46  ;;  %v2591_v53 = vcvt.s32.f32 %v415_v47 }
 0x17c   :  { %v2594_v56 = vsel %vm242_vm1, %v314_v48, 2147483647  ;;  %v2597_v57 = vsel %vm242_vm1, %v315_v49, 2147483647 }
 0x17d   :  { %v272_v60 = vpop.xlane.xlu1 %271  ;;  %403 = vmin.xlane.f32.xlu1 %v2589_v52  ;;  %418 = vmin.xlane.f32.xlu0 %v2591_v53  ;;  %v275_v61 = vpop.xlane.xlu0 %274  ;;  %v430_v63 = vshra.s32 %v2594_v56, 16  ;;  %v445_v0 = vshra.s32 %v2597_v57, 16 }
 0x17e   :  { %vm300_vm11 = vcmp.eq.f32.partialorder %v2493_v50, %v272_v60  ;;  %vm301_vm12 = vcmp.eq.f32.partialorder %v2495_v51, %v275_v61 }
 0x17f   :  { %v316_v1 = vsel %vm300_vm11, %v2526_v3, 16  ;;  %v317_v4 = vsel %vm301_vm12, %v2526_v3, 16  ;;  %v2607_v5 = vcvt.s32.f32 %v430_v63  ;;  %v2609_v7 = vcvt.s32.f32 %v445_v0 }
 0x180   :  { %v2612_v8 = vsel %vm242_vm1, %v316_v1, 2147483647  ;;  %v2615_v9 = vsel %vm242_vm1, %v317_v4, 2147483647 }
 0x181   :  { %v278_v10 = vpop.xlane.xlu1 %277  ;;  %433 = vmin.xlane.f32.xlu1 %v2607_v5  ;;  %448 = vmin.xlane.f32.xlu0 %v2609_v7  ;;  %v281_v11 = vpop.xlane.xlu0 %280  ;;  %v460_v15 = vshra.s32 %v2612_v8, 16  ;;  %v475_v16 = vshra.s32 %v2615_v9, 16 }
 0x182   :  { %vm302_vm13 = vcmp.eq.f32.partialorder %v2501_v54, %v278_v10  ;;  %vm303_vm14 = vcmp.eq.f32.partialorder %v2503_v55, %v281_v11 }
 0x183   :  { %v318_v17 = vsel %vm302_vm13, %v2526_v3, 16  ;;  %v319_v18 = vsel %vm303_vm14, %v2526_v3, 16  ;;  %v2625_v19 = vcvt.s32.f32 %v460_v15  ;;  %v2627_v21 = vcvt.s32.f32 %v475_v16 }
 0x184   :  { %v2630_v28 = vsel %vm242_vm1, %v318_v17, 2147483647  ;;  %v2633_v29 = vsel %vm242_vm1, %v319_v18, 2147483647  ;;  %v324_v16 = vand.u32 65535, %v2531_v6  ;;  %v369_v6 = vand.u32 65535, %v2558_v25 }
 0x185   :  { %v284_v31 = vpop.xlane.xlu1 %283  ;;  %463 = vmin.xlane.f32.xlu1 %v2625_v19  ;;  %478 = vmin.xlane.f32.xlu0 %v2627_v21  ;;  %v287_v32 = vpop.xlane.xlu0 %286  ;;  %v490_v33 = vshra.s32 %v2630_v28, 16  ;;  %v505_v34 = vshra.s32 %v2633_v29, 16  ;;  %v399_v25 = vand.u32 65535, %v2576_v39  ;;  %v429_v39 = vand.u32 65535, %v2594_v56 }
 0x186   :  { %vm304_vm15 = vcmp.eq.f32.partialorder %v2509_v58, %v284_v31  ;;  %vm305_vm2 = vcmp.eq.f32.partialorder %v2511_v59, %v287_v32  ;;  %v326_v18 = vcvt.s32.f32 %v324_v16  ;;  %v339_v31 = vand.u32 65535, %v2544_v14 }
 0x187   :  { %v320_v41 = vsel %vm304_vm15, %v2526_v3, 16  ;;  %v321_v42 = vsel %vm305_vm2, %v2526_v3, 16  ;;  %v2643_v46 = vcvt.s32.f32 %v490_v33  ;;  %v2645_v47 = vcvt.s32.f32 %v505_v34 }
 0x188   :  { %v2648_v48 = vsel %vm242_vm1, %v320_v41, 2147483647  ;;  %v2651_v49 = vsel %vm242_vm1, %v321_v42, 2147483647  ;;  %v354_v32 = vand.u32 65535, %v2541_v13  ;;  %v341_v42 = vcvt.s32.f32 %v339_v31 }
 0x189   :  { %v290_v60 = vpop.xlane.xlu1 %289  ;;  %493 = vmin.xlane.f32.xlu1 %v2643_v46  ;;  %508 = vmin.xlane.f32.xlu0 %v2645_v47  ;;  %v520_v61 = vshra.s32 %v2648_v48, 16  ;;  %v535_v63 = vshra.s32 %v2651_v49, 16  ;;  %v401_v31 = vcvt.s32.f32 %v399_v25  ;;  %v459_v56 = vand.u32 65535, %v2612_v8 }
 0x18a   :  { %vm306_vm3 = vcmp.eq.f32.partialorder %v2517_v62, %v290_v60  ;;  %v356_v60 = vcvt.s32.f32 %v354_v32  ;;  %v489_v8 = vand.u32 65535, %v2630_v28 }
 0x18b   :  { %v322_v0 = vsel %vm306_vm3, %v2526_v3, 16  ;;  %v2659_v1 = vcvt.s32.f32 %v520_v61  ;;  %v2661_v4 = vcvt.s32.f32 %v535_v63  ;;  %v384_v61 = vand.u32 65535, %v2561_v26 }
 0x18c   :  { %v2664_v10 = vsel %vm242_vm1, %v322_v0, 2147483647  ;;  %v371_v0 = vcvt.s32.f32 %v369_v6  ;;  %v414_v26 = vand.u32 65535, %v2579_v40  ;;  %v444_v40 = vand.u32 65535, %v2597_v57 }
 0x18d   :  { %523 = vmin.xlane.f32.xlu1 %v2659_v1  ;;  %538 = vmin.xlane.f32.xlu0 %v2661_v4  ;;  %v550_v11 = vshra.s32 %v2664_v10, 16  ;;  %v474_v57 = vand.u32 65535, %v2615_v9  ;;  %v504_v9 = vand.u32 65535, %v2633_v29 }
 0x18e   :  { %v416_v32 = vcvt.s32.f32 %v414_v26  ;;  %v446_v6 = vcvt.s32.f32 %v444_v40 }
 0x18f   :  { %v2669_v15 = vcvt.s32.f32 %v550_v11  ;;  %v386_v11 = vcvt.s32.f32 %v384_v61 }
 0x191   :  { %553 = vmin.xlane.f32.xlu1 %v2669_v15 }
 0x1fe   :  { %v2673_v17 = vpop.xlane.xlu0 %328 }
 0x1ff   :  { %vm330_vm4 = vcmp.eq.f32.partialorder %v2538_v12, %v2673_v17 }
 0x200   :  { %v331_v33 = vsel %vm330_vm4, %v326_v18, inf }
 0x201   :  { %332 = vmin.xlane.f32.xlu0 %v331_v33 }
 0x202   :  { %v2679_v34 = vpop.xlane.xlu1 %343  ;;  %v2681_v41 = vpop.xlane.xlu0 %358 }
 0x203   :  { %vm345_vm5 = vcmp.eq.f32.partialorder %v2555_v24, %v2679_v34  ;;  %vm360_vm6 = vcmp.eq.f32.partialorder %v2553_v22, %v2681_v41 }
 0x204   :  { %v346_v13 = vsel %vm345_vm5, %v341_v42, inf  ;;  %v361_v12 = vsel %vm360_vm6, %v356_v60, inf  ;;  %v431_v60 = vcvt.s32.f32 %v429_v39 }
 0x205   :  { %347 = vmin.xlane.f32.xlu1 %v346_v13  ;;  %362 = vmin.xlane.f32.xlu0 %v361_v12  ;;  %v461_v12 = vcvt.s32.f32 %v459_v56  ;;  %v350_v56 = vcvt.f32.s32 %v2679_v34 }
 0x206   :  { %v2689_v14 = vpop.xlane.xlu1 %373  ;;  %v2691_v63 = vpop.xlane.xlu0 %388 }
 0x207   :  { %vm375_vm7 = vcmp.eq.f32.partialorder %v2571_v37, %v2689_v14  ;;  %vm390_vm8 = vcmp.eq.f32.partialorder %v2573_v38, %v2691_v63 }
 0x208   :  { %v376_v22 = vsel %vm375_vm7, %v371_v0, inf  ;;  %v391_v24 = vsel %vm390_vm8, %v386_v11, inf  ;;  %v476_v0 = vcvt.s32.f32 %v474_v57 }
 0x209   :  { %377 = vmin.xlane.f32.xlu1 %v376_v22  ;;  %392 = vmin.xlane.f32.xlu0 %v391_v24  ;;  %v506_v22 = vcvt.s32.f32 %v504_v9  ;;  %v534_v24 = vand.u32 65535, %v2651_v49 }
 0x20a   :  { %v2699_v16 = vpop.xlane.xlu1 %403  ;;  %v2701_v18 = vpop.xlane.xlu0 %418 }
 0x20b   :  { %vm405_vm9 = vcmp.eq.f32.partialorder %v2589_v52, %v2699_v16  ;;  %vm420_vm10 = vcmp.eq.f32.partialorder %v2591_v53, %v2701_v18  ;;  %v536_v49 = vcvt.s32.f32 %v534_v24 }
 0x20c   :  { %v406_v37 = vsel %vm405_vm9, %v401_v31, inf  ;;  %v421_v38 = vsel %vm420_vm10, %v416_v32, inf }
 0x20d   :  { %407 = vmin.xlane.f32.xlu1 %v406_v37  ;;  %422 = vmin.xlane.f32.xlu0 %v421_v38  ;;  %v549_v37 = vand.u32 65535, %v2664_v10  ;;  %v335_v10 = vcvt.f32.s32 %v2673_v17  ;;  %v3801_v17 = vmov 0.0  }
 0x20e   :  { %v2709_v33 = vpop.xlane.xlu1 %433  ;;  %v2711_v42 = vpop.xlane.xlu0 %448 }
 0x20f   :  { %vm435_vm11 = vcmp.eq.f32.partialorder %v2607_v5, %v2709_v33  ;;  %vm450_vm12 = vcmp.eq.f32.partialorder %v2609_v7, %v2711_v42  ;;  %v37_v5 = vld [vmem:[%s3796_s2] sm:$0xff]  ;;  %v38_v7 = vld [vmem:[%s3796_s2 + $0x8] sm:$0xff]  ;;  %v336_v57 = vshll.u32 %v335_v10, 16 }
 0x210   :  { %v436_v52 = vsel %vm435_vm11, %v431_v60, inf  ;;  %v451_v53 = vsel %vm450_vm12, %v446_v6, inf  ;;  %v2307_v26 = vpack.c.bf16 %v38_v7, %v37_v5  ;;  %v551_v60 = vcvt.s32.f32 %v549_v37 }
 0x211   :  { %437 = vmin.xlane.f32.xlu1 %v436_v52  ;;  %452 = vmin.xlane.f32.xlu0 %v451_v53 }
 0x212   :  { %v2719_v61 = vpop.xlane.xlu1 %463  ;;  %v2721_v13 = vpop.xlane.xlu0 %478  ;;  %2308 = vmatprep.subr.bf16.mxu1 %v2307_v26  ;;  %2312 = vmatprep.subr.bf16.mxu0 %v2307_v26 }
 0x213   :  { %vm465_vm13 = vcmp.eq.f32.partialorder %v2625_v19, %v2719_v61  ;;  %vm480_vm14 = vcmp.eq.f32.partialorder %v2627_v21, %v2721_v13  ;;  %v491_v19 = vcvt.s32.f32 %v489_v8  ;;  %v519_v21 = vand.u32 65535, %v2648_v48  ;;  %2310 = vmatpush3.bf16.msra.mxu1 %v2307_v26  ;;  %2314 = vmatpush3.bf16.msra.mxu0 %v2307_v26 }
 0x214   :  { %v466_v11 = vsel %vm465_vm13, %v461_v12, inf  ;;  %v481_v25 = vsel %vm480_vm14, %v476_v0, inf  ;;  %v351_v12 = vshll.u32 %v350_v56, 16  ;;  %v380_v0 = vcvt.f32.s32 %v2689_v14 }
 0x215   :  { %467 = vmin.xlane.f32.xlu1 %v466_v11  ;;  %482 = vmin.xlane.f32.xlu0 %v481_v25  ;;  %v521_v48 = vcvt.s32.f32 %v519_v21  ;;  %v395_v8 = vcvt.f32.s32 %v2691_v63  ;;  %v425_v21 = vcvt.f32.s32 %v2701_v18  ;;  %v455_v56 = vcvt.f32.s32 %v2711_v42 }
 0x216   :  { %v2735_v28 = vpop.xlane.xlu1 %493  ;;  %v2737_v29 = vpop.xlane.xlu0 %508  ;;  %v381_v63 = vshll.u32 %v380_v0, 16 }
 0x217   :  { %vm495_vm15 = vcmp.eq.f32.partialorder %v2643_v46, %v2735_v28  ;;  %vm510_vm2 = vcmp.eq.f32.partialorder %v2645_v47, %v2737_v29  ;;  %v426_v10 = vshll.u32 %v425_v21, 16 }
 0x218   :  { %v496_v31 = vsel %vm495_vm15, %v491_v19, inf  ;;  %v511_v32 = vsel %vm510_vm2, %v506_v22, inf  ;;  %v396_v19 = vshll.u32 %v395_v8, 16  ;;  %v410_v22 = vcvt.f32.s32 %v2699_v16 }
 0x219   :  { %497 = vmin.xlane.f32.xlu1 %v496_v31  ;;  %512 = vmin.xlane.f32.xlu0 %v511_v32 }
 0x21a   :  { %v2745_v39 = vpop.xlane.xlu1 %523  ;;  %v2747_v40 = vpop.xlane.xlu0 %538 }
 0x21b   :  { %vm525_vm3 = vcmp.eq.f32.partialorder %v2659_v1, %v2745_v39  ;;  %vm540_vm4 = vcmp.eq.f32.partialorder %v2661_v4, %v2747_v40  ;;  %v365_v4 = vcvt.f32.s32 %v2681_v41 }
 0x21c   :  { %v526_v46 = vsel %vm525_vm3, %v521_v48, inf  ;;  %v541_v47 = vsel %vm540_vm4, %v536_v49, inf }
 0x21d   :  { %527 = vmin.xlane.f32.xlu1 %v526_v46  ;;  %542 = vmin.xlane.f32.xlu0 %v541_v47 }
 0x21e   :  { %v2754_v38 = vpop.xlane.xlu1 %553 }
 0x21f   :  { %vm555_vm5 = vcmp.eq.f32.partialorder %v2669_v15, %v2754_v38  ;;  %v366_v15 = vshll.u32 %v365_v4, 16 }
 0x220   :  { %v556_v6 = vsel %vm555_vm5, %v551_v60, inf }
 0x221   :  { %557 = vmin.xlane.f32.xlu1 %v556_v6  ;;  %v411_v6 = vshll.u32 %v410_v22, 16 }
 0x28e   :  { %v333_v1 = vpop.xlane.xlu0 %332 }
 0x28f   :  { %v334_v52 = vcvt.f32.s32 %v333_v1 }
 0x291   :  { %v337_v53 = vadd.s32 %v336_v57, %v334_v52 }
 0x292   :  { %v348_v9 = vpop.xlane.xlu1 %347  ;;  %v363_v5 = vpop.xlane.xlu0 %362 }
 0x293   :  { %v349_v7 = vcvt.f32.s32 %v348_v9  ;;  %v364_v11 = vcvt.f32.s32 %v363_v5  ;;  %vm563_vm6 = vcmp.eq.s32.totalorder %v2526_v3, %v337_v53 }
 0x294   :  { %v2107_v34 = vsel %vm563_vm6, 1.0, %v3801_v17  ;;  %v2766_v25 = vsel %vm563_vm6, inf, %v2461_v20 }
 0x295   :  { %v352_v41 = vadd.s32 %v351_v12, %v349_v7  ;;  %v367_v26 = vadd.s32 %v366_v15, %v364_v11  ;;  %2255 = vmatprep.mubr.msk.f32.mxu1 %vm242_vm1, %v2107_v34  ;;  %v595_v14 = vsel %vm242_vm1, %v2766_v25, inf  ;;  %v456_v15 = vshll.u32 %v455_v56, 16 }
 0x296   :  { %v378_v24 = vpop.xlane.xlu1 %377  ;;  %596 = vmin.xlane.f32.xlu0 %v595_v14  ;;  %v393_v31 = vpop.xlane.xlu0 %392  ;;  %v485_v7 = vcvt.f32.s32 %v2721_v13 }
 0x297   :  { %vm564_vm7 = vcmp.eq.s32.totalorder %v2526_v3, %v352_v41  ;;  %v379_v20 = vcvt.f32.s32 %v378_v24  ;;  %v394_v32 = vcvt.f32.s32 %v393_v31  ;;  %vm565_vm8 = vcmp.eq.s32.totalorder %v2526_v3, %v367_v26 }
 0x298   :  { %v2108_v48 = vsel %vm564_vm7, 1.0, %v3801_v17  ;;  %v2777_v49 = vsel %vm564_vm7, inf, %v2463_v23  ;;  %v2109_v37 = vsel %vm565_vm8, 1.0, %v3801_v17  ;;  %v2781_v16 = vsel %vm565_vm8, inf, %v2467_v27 }
 0x299   :  { %v382_v18 = vadd.s32 %v381_v63, %v379_v20  ;;  %v397_v46 = vadd.s32 %v396_v19, %v394_v32  ;;  %2256 = vmatmul.mubr.msk.f32.vlgmr.msra.gmra.mrb[8].mxu1 %vm242_vm1, %v2108_v48  ;;  %v598_v47 = vsel %vm242_vm1, %v2777_v49, inf  ;;  %v601_v60 = vsel %vm242_vm1, %v2781_v16, inf }
 0x29a   :  { %v440_v23 = vcvt.f32.s32 %v2709_v33  ;;  %599 = vmin.xlane.f32.xlu1 %v598_v47  ;;  %v408_v1 = vpop.xlane.xlu1 %407  ;;  %2258 = vmatprep.mubr.msk.f32.mxu1 %vm242_vm1, %v2109_v37  ;;  %v423_v27 = vpop.xlane.xlu0 %422  ;;  %v486_v31 = vshll.u32 %v485_v7, 16  ;;  %v515_v20 = vcvt.f32.s32 %v2737_v29 }
 0x29b   :  { %v409_v57 = vcvt.f32.s32 %v408_v1  ;;  %602 = vmin.xlane.f32.xlu0 %v601_v60  ;;  %v424_v4 = vcvt.f32.s32 %v423_v27  ;;  %vm566_vm9 = vcmp.eq.s32.totalorder %v2526_v3, %v382_v18  ;;  %vm567_vm10 = vcmp.eq.s32.totalorder %v2526_v3, %v397_v46 }
 0x29c   :  { %v2110_v52 = vsel %vm566_vm9, 1.0, %v3801_v17  ;;  %v2795_v53 = vsel %vm566_vm9, inf, %v2469_v30  ;;  %v2111_v33 = vsel %vm567_vm10, 1.0, %v3801_v17  ;;  %v2799_v42 = vsel %vm567_vm10, inf, %v2477_v36 }
 0x29d   :  { %v412_v12 = vadd.s32 %v411_v6, %v409_v57  ;;  %v427_v0 = vadd.s32 %v426_v10, %v424_v4  ;;  %2259 = vmatmul.mubr.msk.f32.gmra.mrb[10].mxu1 %vm242_vm1, %v2110_v52  ;;  %v604_v8 = vsel %vm242_vm1, %v2795_v53, inf  ;;  %v607_v9 = vsel %vm242_vm1, %v2799_v42, inf }
 0x29e   :  { %v441_v5 = vshll.u32 %v440_v23, 16  ;;  %v470_v30 = vcvt.f32.s32 %v2719_v61  ;;  %605 = vmin.xlane.f32.xlu1 %v604_v8  ;;  %v438_v11 = vpop.xlane.xlu1 %437  ;;  %2261 = vmatprep.mubr.msk.f32.mxu1 %vm242_vm1, %v2111_v33  ;;  %v453_v36 = vpop.xlane.xlu0 %452  ;;  %v516_v56 = vshll.u32 %v515_v20, 16  ;;  %v545_v1 = vcvt.f32.s32 %v2747_v40 }
 0x29f   :  { %v439_v34 = vcvt.f32.s32 %v438_v11  ;;  %608 = vmin.xlane.f32.xlu0 %v607_v9  ;;  %v454_v41 = vcvt.f32.s32 %v453_v36  ;;  %vm568_vm11 = vcmp.eq.s32.totalorder %v2526_v3, %v412_v12  ;;  %vm569_vm12 = vcmp.eq.s32.totalorder %v2526_v3, %v427_v0 }
 0x2a0   :  { %v2112_v26 = vsel %vm568_vm11, 1.0, %v3801_v17  ;;  %v2813_v14 = vsel %vm568_vm11, inf, %v2475_v35  ;;  %v2113_v61 = vsel %vm569_vm12, 1.0, %v3801_v17  ;;  %v2817_v13 = vsel %vm569_vm12, inf, %v2485_v44 }
 0x2a1   :  { %v442_v63 = vadd.s32 %v441_v5, %v439_v34  ;;  %v457_v19 = vadd.s32 %v456_v15, %v454_v41  ;;  %2262 = vmatmul.mubr.msk.f32.gmra.mrb[12].mxu1 %vm242_vm1, %v2112_v26  ;;  %v610_v22 = vsel %vm242_vm1, %v2813_v14, inf  ;;  %v613_v21 = vsel %vm242_vm1, %v2817_v13, inf }
 0x2a2   :  { %v471_v24 = vshll.u32 %v470_v30, 16  ;;  %v500_v35 = vcvt.f32.s32 %v2735_v28  ;;  %611 = vmin.xlane.f32.xlu1 %v610_v22  ;;  %v468_v32 = vpop.xlane.xlu1 %467  ;;  %2264 = vmatprep.mubr.msk.f32.mxu1 %vm242_vm1, %v2113_v61  ;;  %v483_v44 = vpop.xlane.xlu0 %482  ;;  %v546_v15 = vshll.u32 %v545_v1, 16 }
 0x2a3   :  { %v469_v48 = vcvt.f32.s32 %v468_v32  ;;  %614 = vmin.xlane.f32.xlu0 %v613_v21  ;;  %v484_v37 = vcvt.f32.s32 %v483_v44  ;;  %vm570_vm13 = vcmp.eq.s32.totalorder %v2526_v3, %v442_v63  ;;  %vm571_vm14 = vcmp.eq.s32.totalorder %v2526_v3, %v457_v19 }
 0x2a4   :  { %v2114_v18 = vsel %vm570_vm13, 1.0, %v3801_v17  ;;  %v2831_v46 = vsel %vm570_vm13, inf, %v2483_v43  ;;  %v2115_v28 = vsel %vm571_vm14, 1.0, %v3801_v17  ;;  %v2835_v29 = vsel %vm571_vm14, inf, %v2487_v45 }
 0x2a5   :  { %v472_v47 = vadd.s32 %v471_v24, %v469_v48  ;;  %v487_v60 = vadd.s32 %v486_v31, %v484_v37  ;;  %2265 = vmatmul.mubr.msk.f32.gmra.mrb[14].mxu1 %vm242_vm1, %v2114_v18  ;;  %v616_v6 = vsel %vm242_vm1, %v2831_v46, inf  ;;  %v619_v10 = vsel %vm242_vm1, %v2835_v29, inf }
 0x2a6   :  { %v501_v23 = vshll.u32 %v500_v35, 16  ;;  %v530_v43 = vcvt.f32.s32 %v2745_v39  ;;  %617 = vmin.xlane.f32.xlu1 %v616_v6  ;;  %v498_v27 = vpop.xlane.xlu1 %497  ;;  %2267 = vmatprep.mubr.msk.f32.mxu1 %vm242_vm1, %v2115_v28  ;;  %v513_v45 = vpop.xlane.xlu0 %512 }
 0x2a7   :  { %v499_v57 = vcvt.f32.s32 %v498_v27  ;;  %620 = vmin.xlane.f32.xlu0 %v619_v10  ;;  %v514_v4 = vcvt.f32.s32 %v513_v45  ;;  %vm572_vm15 = vcmp.eq.s32.totalorder %v2526_v3, %v472_v47  ;;  %vm573_vm2 = vcmp.eq.s32.totalorder %v2526_v3, %v487_v60 }
 0x2a8   :  { %v2116_v52 = vsel %vm572_vm15, 1.0, %v3801_v17  ;;  %v2849_v33 = vsel %vm572_vm15, inf, %v2493_v50  ;;  %v2117_v39 = vsel %vm573_vm2, 1.0, %v3801_v17  ;;  %v2853_v40 = vsel %vm573_vm2, inf, %v2495_v51 }
 0x2a9   :  { %v502_v12 = vadd.s32 %v501_v23, %v499_v57  ;;  %v517_v0 = vadd.s32 %v516_v56, %v514_v4  ;;  %2268 = vmatmul.mubr.msk.f32.gmra.mrb[16].mxu1 %vm242_vm1, %v2116_v52  ;;  %v622_v8 = vsel %vm242_vm1, %v2849_v33, inf  ;;  %v625_v9 = vsel %vm242_vm1, %v2853_v40, inf }
 0x2aa   :  { %v531_v5 = vshll.u32 %v530_v43, 16  ;;  %v560_v50 = vcvt.f32.s32 %v2754_v38  ;;  %623 = vmin.xlane.f32.xlu1 %v622_v8  ;;  %v528_v30 = vpop.xlane.xlu1 %527  ;;  %2270 = vmatprep.mubr.msk.f32.mxu1 %vm242_vm1, %v2117_v39  ;;  %v543_v51 = vpop.xlane.xlu0 %542 }
 0x2ab   :  { %v529_v7 = vcvt.f32.s32 %v528_v30  ;;  %626 = vmin.xlane.f32.xlu0 %v625_v9  ;;  %v544_v11 = vcvt.f32.s32 %v543_v51  ;;  %vm574_vm3 = vcmp.eq.s32.totalorder %v2526_v3, %v502_v12  ;;  %vm575_vm4 = vcmp.eq.s32.totalorder %v2526_v3, %v517_v0 }
 0x2ac   :  { %v2118_v36 = vsel %vm574_vm3, 1.0, %v3801_v17  ;;  %v2866_v34 = vsel %vm574_vm3, inf, %v2501_v54  ;;  %v2119_v41 = vsel %vm575_vm4, 1.0, %v3801_v17  ;;  %v2870_v38 = vsel %vm575_vm4, inf, %v2503_v55 }
 0x2ad   :  { %v532_v26 = vadd.s32 %v531_v5, %v529_v7  ;;  %v547_v61 = vadd.s32 %v546_v15, %v544_v11  ;;  %2271 = vmatmul.mubr.msk.f32.gmra.mrb[18].mxu1 %vm242_vm1, %v2118_v36  ;;  %v628_v63 = vsel %vm242_vm1, %v2866_v34, inf  ;;  %v631_v19 = vsel %vm242_vm1, %v2870_v38, inf }
 0x2ae   :  { %629 = vmin.xlane.f32.xlu1 %v628_v63  ;;  %v558_v22 = vpop.xlane.xlu1 %557  ;;  %2273 = vmatprep.mubr.msk.f32.mxu1 %vm242_vm1, %v2119_v41  ;;  %v561_v54 = vshll.u32 %v560_v50, 16 }
 0x2af   :  { %v559_v21 = vcvt.f32.s32 %v558_v22  ;;  %632 = vmin.xlane.f32.xlu0 %v631_v19  ;;  %vm576_vm5 = vcmp.eq.s32.totalorder %v2526_v3, %v532_v26  ;;  %vm577_vm6 = vcmp.eq.s32.totalorder %v2526_v3, %v547_v61 }
 0x2b0   :  { %v2120_v55 = vsel %vm576_vm5, 1.0, %v3801_v17  ;;  %v2882_v24 = vsel %vm576_vm5, inf, %v2509_v58  ;;  %v2121_v31 = vsel %vm577_vm6, 1.0, %v3801_v17  ;;  %v2886_v35 = vsel %vm577_vm6, inf, %v2511_v59 }
 0x2b1   :  { %v562_v20 = vadd.s32 %v561_v54, %v559_v21  ;;  %2274 = vmatmul.mubr.msk.f32.gmra.mrb[20].mxu1 %vm242_vm1, %v2120_v55  ;;  %v634_v32 = vsel %vm242_vm1, %v2882_v24, inf  ;;  %v637_v44 = vsel %vm242_vm1, %v2886_v35, inf }
 0x2b2   :  { %635 = vmin.xlane.f32.xlu1 %v634_v32  ;;  %2276 = vmatprep.mubr.msk.f32.mxu1 %vm242_vm1, %v2121_v31 }
 0x2b3   :  { %638 = vmin.xlane.f32.xlu0 %v637_v44  ;;  %vm578_vm7 = vcmp.eq.s32.totalorder %v2526_v3, %v562_v20 }
 0x2b4   :  { %v2122_v58 = vsel %vm578_vm7, 1.0, %v3801_v17  ;;  %v2897_v59 = vsel %vm578_vm7, inf, %v2517_v62 }
 0x2b5   :  { %2277 = vmatmul.mubr.msk.f32.gmra.mrb[22].mxu1 %vm242_vm1, %v2122_v58  ;;  %v640_v48 = vsel %vm242_vm1, %v2897_v59, inf }
 0x2b6   :  { %641 = vmin.xlane.f32.xlu1 %v640_v48 }
 0x323   :  { %v597_v37 = vpop.xlane.xlu0 %596 }
 0x324   :  { %vm643_vm8 = vcmp.eq.f32.partialorder %v2766_v25, %v597_v37 }
 0x325   :  { %v659_v18 = vsel %vm643_vm8, %v2526_v3, 16 }
 0x326   :  { %v2905_v28 = vsel %vm242_vm1, %v659_v18, 2147483647 }
 0x327   :  { %v600_v47 = vpop.xlane.xlu1 %599  ;;  %v677_v60 = vshra.s32 %v2905_v28, 16 }
 0x328   :  { %vm644_vm9 = vcmp.eq.f32.partialorder %v2777_v49, %v600_v47  ;;  %v603_v62 = vpop.xlane.xlu0 %602 }
 0x329   :  { %v660_v6 = vsel %vm644_vm9, %v2526_v3, 16  ;;  %vm645_vm10 = vcmp.eq.f32.partialorder %v2781_v16, %v603_v62  ;;  %v2911_v10 = vcvt.s32.f32 %v677_v60 }
 0x32a   :  { %v661_v23 = vsel %vm645_vm10, %v2526_v3, 16  ;;  %v2915_v56 = vsel %vm242_vm1, %v660_v6, 2147483647 }
 0x32b   :  { %v606_v43 = vpop.xlane.xlu1 %605  ;;  %680 = vmin.xlane.f32.xlu0 %v2911_v10  ;;  %v692_v1 = vshra.s32 %v2915_v56, 16  ;;  %v2920_v27 = vsel %vm242_vm1, %v661_v23, 2147483647 }
 0x32c   :  { %vm646_vm11 = vcmp.eq.f32.partialorder %v2795_v53, %v606_v43  ;;  %v609_v45 = vpop.xlane.xlu0 %608  ;;  %v707_v57 = vshra.s32 %v2920_v27, 16 }
 0x32d   :  { %v662_v4 = vsel %vm646_vm11, %v2526_v3, 16  ;;  %vm647_vm12 = vcmp.eq.f32.partialorder %v2799_v42, %v609_v45  ;;  %v2926_v52 = vcvt.s32.f32 %v692_v1 }
 0x32e   :  { %v663_v39 = vsel %vm647_vm12, %v2526_v3, 16  ;;  %v2929_v12 = vcvt.s32.f32 %v707_v57  ;;  %v2932_v0 = vsel %vm242_vm1, %v662_v4, 2147483647 }
 0x32f   :  { %695 = vmin.xlane.f32.xlu1 %v2926_v52  ;;  %v612_v8 = vpop.xlane.xlu1 %611  ;;  %v722_v9 = vshra.s32 %v2932_v0, 16  ;;  %v2937_v5 = vsel %vm242_vm1, %v663_v39, 2147483647 }
 0x330   :  { %vm648_vm13 = vcmp.eq.f32.partialorder %v2813_v14, %v612_v8  ;;  %710 = vmin.xlane.f32.xlu0 %v2929_v12  ;;  %v615_v15 = vpop.xlane.xlu0 %614  ;;  %v737_v50 = vshra.s32 %v2937_v5, 16 }
 0x331   :  { %v664_v30 = vsel %vm648_vm13, %v2526_v3, 16  ;;  %vm649_vm14 = vcmp.eq.f32.partialorder %v2817_v13, %v615_v15  ;;  %v2944_v51 = vcvt.s32.f32 %v722_v9 }
 0x332   :  { %v665_v7 = vsel %vm649_vm14, %v2526_v3, 16  ;;  %v2947_v11 = vcvt.s32.f32 %v737_v50  ;;  %v2950_v36 = vsel %vm242_vm1, %v664_v30, 2147483647 }
 0x333   :  { %725 = vmin.xlane.f32.xlu1 %v2944_v51  ;;  %v618_v41 = vpop.xlane.xlu1 %617  ;;  %v752_v26 = vshra.s32 %v2950_v36, 16  ;;  %v2955_v61 = vsel %vm242_vm1, %v665_v7, 2147483647 }
 0x334   :  { %vm650_vm15 = vcmp.eq.f32.partialorder %v2831_v46, %v618_v41  ;;  %740 = vmin.xlane.f32.xlu0 %v2947_v11  ;;  %v621_v63 = vpop.xlane.xlu0 %620  ;;  %v767_v19 = vshra.s32 %v2955_v61, 16 }
 0x335   :  { %v666_v22 = vsel %vm650_vm15, %v2526_v3, 16  ;;  %vm651_vm2 = vcmp.eq.f32.partialorder %v2835_v29, %v621_v63  ;;  %v2962_v54 = vcvt.s32.f32 %v752_v26 }
 0x336   :  { %v667_v21 = vsel %vm651_vm2, %v2526_v3, 16  ;;  %v2965_v55 = vcvt.s32.f32 %v767_v19  ;;  %v2968_v31 = vsel %vm242_vm1, %v666_v22, 2147483647 }
 0x337   :  { %755 = vmin.xlane.f32.xlu1 %v2962_v54  ;;  %v624_v20 = vpop.xlane.xlu1 %623  ;;  %v782_v32 = vshra.s32 %v2968_v31, 16  ;;  %v2973_v44 = vsel %vm242_vm1, %v667_v21, 2147483647 }
 0x338   :  { %vm652_vm3 = vcmp.eq.f32.partialorder %v2849_v33, %v624_v20  ;;  %770 = vmin.xlane.f32.xlu0 %v2965_v55  ;;  %v627_v58 = vpop.xlane.xlu0 %626  ;;  %v797_v48 = vshra.s32 %v2973_v44, 16 }
 0x339   :  { %v668_v37 = vsel %vm652_vm3, %v2526_v3, 16  ;;  %vm653_vm4 = vcmp.eq.f32.partialorder %v2853_v40, %v627_v58  ;;  %v2980_v18 = vcvt.s32.f32 %v782_v32 }
 0x33a   :  { %v669_v47 = vsel %vm653_vm4, %v2526_v3, 16  ;;  %v2983_v60 = vcvt.s32.f32 %v797_v48  ;;  %v2986_v62 = vsel %vm242_vm1, %v668_v37, 2147483647 }
 0x33b   :  { %785 = vmin.xlane.f32.xlu1 %v2980_v18  ;;  %v630_v6 = vpop.xlane.xlu1 %629  ;;  %v812_v23 = vshra.s32 %v2986_v62, 16  ;;  %v2991_v43 = vsel %vm242_vm1, %v669_v47, 2147483647 }
 0x33c   :  { %vm654_vm5 = vcmp.eq.f32.partialorder %v2866_v34, %v630_v6  ;;  %800 = vmin.xlane.f32.xlu0 %v2983_v60  ;;  %v633_v1 = vpop.xlane.xlu0 %632  ;;  %v827_v45 = vshra.s32 %v2991_v43, 16 }
 0x33d   :  { %v670_v57 = vsel %vm654_vm5, %v2526_v3, 16  ;;  %vm655_vm6 = vcmp.eq.f32.partialorder %v2870_v38, %v633_v1  ;;  %v2998_v4 = vcvt.s32.f32 %v812_v23 }
 0x33e   :  { %v671_v39 = vsel %vm655_vm6, %v2526_v3, 16  ;;  %v3001_v8 = vcvt.s32.f32 %v827_v45  ;;  %v3004_v9 = vsel %vm242_vm1, %v670_v57, 2147483647 }
 0x33f   :  { %815 = vmin.xlane.f32.xlu1 %v2998_v4  ;;  %v636_v15 = vpop.xlane.xlu1 %635  ;;  %v842_v50 = vshra.s32 %v3004_v9, 16  ;;  %v3009_v30 = vsel %vm242_vm1, %v671_v39, 2147483647 }
 0x340   :  { %vm656_vm7 = vcmp.eq.f32.partialorder %v2882_v24, %v636_v15  ;;  %830 = vmin.xlane.f32.xlu0 %v3001_v8  ;;  %v639_v7 = vpop.xlane.xlu0 %638  ;;  %v857_v41 = vshra.s32 %v3009_v30, 16 }
 0x341   :  { %v672_v26 = vsel %vm656_vm7, %v2526_v3, 16  ;;  %vm657_vm8 = vcmp.eq.f32.partialorder %v2886_v35, %v639_v7  ;;  %v3016_v63 = vcvt.s32.f32 %v842_v50 }
 0x342   :  { %v673_v19 = vsel %vm657_vm8, %v2526_v3, 16  ;;  %v3019_v22 = vcvt.s32.f32 %v857_v41  ;;  %v3022_v21 = vsel %vm242_vm1, %v672_v26, 2147483647 }
 0x343   :  { %845 = vmin.xlane.f32.xlu1 %v3016_v63  ;;  %v642_v20 = vpop.xlane.xlu1 %641  ;;  %v872_v32 = vshra.s32 %v3022_v21, 16  ;;  %v3027_v58 = vsel %vm242_vm1, %v673_v19, 2147483647 }
 0x344   :  { %vm658_vm9 = vcmp.eq.f32.partialorder %v2897_v59, %v642_v20  ;;  %860 = vmin.xlane.f32.xlu0 %v3019_v22  ;;  %v887_v48 = vshra.s32 %v3027_v58, 16 }
 0x345   :  { %v674_v37 = vsel %vm658_vm9, %v2526_v3, 16  ;;  %v3033_v47 = vcvt.s32.f32 %v872_v32 }
 0x346   :  { %v3035_v6 = vcvt.s32.f32 %v887_v48  ;;  %v3038_v23 = vsel %vm242_vm1, %v674_v37, 2147483647 }
 0x347   :  { %875 = vmin.xlane.f32.xlu1 %v3033_v47  ;;  %v902_v1 = vshra.s32 %v3038_v23, 16 }
 0x348   :  { %890 = vmin.xlane.f32.xlu0 %v3035_v6 }
 0x349   :  { %v3043_v45 = vcvt.s32.f32 %v902_v1 }
 0x34b   :  { %905 = vmin.xlane.f32.xlu1 %v3043_v45 }
 0x36c   :  { %v3046_v57 = vpop.f32.mrb[8].mxu1 }
 0x36d   :  { %1734 = vst.msk [vmem:[%s3798_s4 + $0x8] sm:$0xff] %vm46_vm0, %v3046_v57  ;;  %v3053_v39 = vpop.f32.mrb[9].mxu1 }
 0x36e   :  { %1733 = vst.msk [vmem:[%s3798_s4] sm:$0xff] %vm46_vm0, %v3053_v39 }
 0x370   :  { %v3060_v15 = vpop.f32.mrb[10].mxu1 }
 0x371   :  { %1736 = vst.msk [vmem:[%s3798_s4 + $0x18] sm:$0xff] %vm46_vm0, %v3060_v15  ;;  %v3067_v50 = vpop.f32.mrb[11].mxu1 }
 0x372   :  { %1735 = vst.msk [vmem:[%s3798_s4 + $0x10] sm:$0xff] %vm46_vm0, %v3067_v50 }
 0x374   :  { %v3074_v7 = vpop.f32.mrb[12].mxu1 }
 0x375   :  { %3814 = vst [vmem:[#allocation5_spill] sm:$0xff] %v3074_v7  ;;  %1738 = vst.msk [vmem:[%s3798_s4 + $0x28] sm:$0xff] %vm46_vm0, %v3074_v7  ;;  %v3081_v41 = vpop.f32.mrb[13].mxu1  ;;  %v721_v7 = vand.u32 65535, %v2932_v0  ;;  %v751_v0 = vand.u32 65535, %v2950_v36  ;;  %v781_v36 = vand.u32 65535, %v2968_v31 }
 0x376   :  { %1737 = vst.msk [vmem:[%s3798_s4 + $0x20] sm:$0xff] %vm46_vm0, %v3081_v41  ;;  %v811_v31 = vand.u32 65535, %v2986_v62  ;;  %v841_v62 = vand.u32 65535, %v3004_v9  ;;  %v871_v9 = vand.u32 65535, %v3022_v21  ;;  %v901_v21 = vand.u32 65535, %v3038_v23 }
 0x378   :  { %v3088_v26 = vpop.f32.mrb[14].mxu1 }
 0x379   :  { %3815 = vst [vmem:[#allocation6_spill] sm:$0xff] %v3088_v26  ;;  %1740 = vst.msk [vmem:[%s3798_s4 + $0x38] sm:$0xff] %vm46_vm0, %v3088_v26  ;;  %v3095_v19 = vpop.f32.mrb[15].mxu1 }
 0x37a   :  { %3816 = vst [vmem:[#allocation7_spill] sm:$0xff] %v3095_v19  ;;  %1739 = vst.msk [vmem:[%s3798_s4 + $0x30] sm:$0xff] %vm46_vm0, %v3095_v19 }
 0x37c   :  { %v3102_v20 = vpop.f32.mrb[16].mxu1 }
 0x37d   :  { %3817 = vst [vmem:[#allocation8_spill] sm:$0xff] %v3102_v20  ;;  %1742 = vst.msk [vmem:[%s3798_s4 + $0x48] sm:$0xff] %vm46_vm0, %v3102_v20  ;;  %v3109_v32 = vpop.f32.mrb[17].mxu1  ;;  %v691_v20 = vand.u32 65535, %v2915_v56  ;;  %v736_v56 = vand.u32 65535, %v2937_v5 }
 0x37e   :  { %3818 = vst [vmem:[#allocation9_spill] sm:$0xff] %v3109_v32  ;;  %1741 = vst.msk [vmem:[%s3798_s4 + $0x40] sm:$0xff] %vm46_vm0, %v3109_v32 }
 0x37f   :  { %v693_v19 = vcvt.s32.f32 %v691_v20 }
 0x380   :  { %v3116_v48 = vpop.f32.mrb[18].mxu1 }
 0x381   :  { %3819 = vst [vmem:[#allocation10_spill] sm:$0xff] %v3116_v48  ;;  %1744 = vst.msk [vmem:[%s3798_s4 + $0x58] sm:$0xff] %vm46_vm0, %v3116_v48  ;;  %v3123_v37 = vpop.f32.mrb[19].mxu1 }
 0x382   :  { %3820 = vst [vmem:[#allocation11_spill] sm:$0xff] %v3123_v37  ;;  %1743 = vst.msk [vmem:[%s3798_s4 + $0x50] sm:$0xff] %vm46_vm0, %v3123_v37 }
 0x384   :  { %v3130_v1 = vpop.f32.mrb[20].mxu1 }
 0x385   :  { %3821 = vst [vmem:[#allocation12_spill] sm:$0xff] %v3130_v1  ;;  %1746 = vst.msk [vmem:[%s3798_s4 + $0x68] sm:$0xff] %vm46_vm0, %v3130_v1  ;;  %v3137_v2 = vpop.f32.mrb[21].mxu1  ;;  %v676_v1 = vand.u32 65535, %v2905_v28 }
 0x386   :  { %3822 = vst [vmem:[#allocation13_spill] sm:$0xff] %v3137_v2  ;;  %1745 = vst.msk [vmem:[%s3798_s4 + $0x60] sm:$0xff] %vm46_vm0, %v3137_v2 }
 0x387   :  { %v678_v2 = vcvt.s32.f32 %v676_v1 }
 0x388   :  { %v3144_v17 = vpop.f32.mrb[22].mxu1 }
 0x389   :  { %3823 = vst [vmem:[#allocation14_spill] sm:$0xff] %v3144_v17  ;;  %1748 = vst.msk [vmem:[%s3798_s4 + $0x78] sm:$0xff] %vm46_vm0, %v3144_v17  ;;  %v3151_v48 = vpop.f32.mrb[23].mxu1  ;;  %v706_v17 = vand.u32 65535, %v2920_v27  ;;  %v723_v27 = vcvt.s32.f32 %v721_v7  ;;  %v753_v7 = vcvt.s32.f32 %v751_v0 }
 0x38a   :  { %3824 = vst [vmem:[#allocation15_spill] sm:$0xff] %v3151_v48  ;;  %1747 = vst.msk [vmem:[%s3798_s4 + $0x70] sm:$0xff] %vm46_vm0, %v3151_v48 }
 0x38b   :  { %v708_v28 = vcvt.s32.f32 %v706_v17  ;;  %v738_v17 = vcvt.s32.f32 %v736_v56 }
 0x3b8   :  { %v3159_v37 = vpop.xlane.xlu0 %680 }
 0x3b9   :  { %vm682_vm10 = vcmp.eq.f32.partialorder %v2911_v10, %v3159_v37 }
 0x3ba   :  { %v683_v32 = vsel %vm682_vm10, %v678_v2, inf }
 0x3bb   :  { %684 = vmin.xlane.f32.xlu0 %v683_v32 }
 0x3bc   :  { %v3165_v26 = vpop.xlane.xlu1 %695 }
 0x3bd   :  { %v3168_v48 = vpop.xlane.xlu0 %710  ;;  %vm697_vm11 = vcmp.eq.f32.partialorder %v2926_v52, %v3165_v26  ;;  %v766_v52 = vand.u32 65535, %v2955_v61  ;;  %v796_v61 = vand.u32 65535, %v2973_v44  ;;  %v826_v44 = vand.u32 65535, %v2991_v43 }
 0x3be   :  { %v698_v1 = vsel %vm697_vm11, %v693_v19, inf  ;;  %vm712_vm12 = vcmp.eq.f32.partialorder %v2929_v12, %v3168_v48  ;;  %v856_v43 = vand.u32 65535, %v3009_v30  ;;  %v886_v30 = vand.u32 65535, %v3027_v58 }
 0x3bf   :  { %699 = vmin.xlane.f32.xlu1 %v698_v1  ;;  %v713_v2 = vsel %vm712_vm12, %v708_v28, inf  ;;  %v783_v1 = vcvt.s32.f32 %v781_v36 }
 0x3c0   :  { %714 = vmin.xlane.f32.xlu0 %v713_v2  ;;  %v3175_v10 = vpop.xlane.xlu1 %725 }
 0x3c1   :  { %v3178_v20 = vpop.xlane.xlu0 %740  ;;  %vm727_vm13 = vcmp.eq.f32.partialorder %v2944_v51, %v3175_v10  ;;  %v768_v51 = vcvt.s32.f32 %v766_v52 }
 0x3c2   :  { %v728_v5 = vsel %vm727_vm13, %v723_v27, inf  ;;  %vm742_vm14 = vcmp.eq.f32.partialorder %v2947_v11, %v3178_v20 }
 0x3c3   :  { %729 = vmin.xlane.f32.xlu1 %v728_v5  ;;  %v743_v12 = vsel %vm742_vm14, %v738_v17, inf  ;;  %v813_v17 = vcvt.s32.f32 %v811_v31  ;;  %v903_v31 = vcvt.s32.f32 %v901_v21 }
 0x3c4   :  { %744 = vmin.xlane.f32.xlu0 %v743_v12  ;;  %v3185_v19 = vpop.xlane.xlu1 %755 }
 0x3c5   :  { %v3188_v32 = vpop.xlane.xlu0 %770  ;;  %vm757_vm15 = vcmp.eq.f32.partialorder %v2962_v54, %v3185_v19  ;;  %v798_v54 = vcvt.s32.f32 %v796_v61 }
 0x3c6   :  { %v758_v28 = vsel %vm757_vm15, %v753_v7, inf  ;;  %vm772_vm2 = vcmp.eq.f32.partialorder %v2965_v55, %v3188_v32  ;;  %v843_v7 = vcvt.s32.f32 %v841_v62  ;;  %v732_v62 = vcvt.f32.s32 %v3175_v10 }
 0x3c7   :  { %759 = vmin.xlane.f32.xlu1 %v758_v28  ;;  %v773_v11 = vsel %vm772_vm2, %v768_v51, inf  ;;  %v873_v28 = vcvt.s32.f32 %v871_v9  ;;  %v777_v21 = vcvt.f32.s32 %v3188_v32 }
 0x3c8   :  { %774 = vmin.xlane.f32.xlu0 %v773_v11  ;;  %v3195_v56 = vpop.xlane.xlu1 %785 }
 0x3c9   :  { %v3198_v2 = vpop.xlane.xlu0 %800  ;;  %vm787_vm3 = vcmp.eq.f32.partialorder %v2980_v18, %v3195_v56  ;;  %v828_v18 = vcvt.s32.f32 %v826_v44 }
 0x3ca   :  { %v788_v27 = vsel %vm787_vm3, %v783_v1, inf  ;;  %vm802_vm4 = vcmp.eq.f32.partialorder %v2983_v60, %v3198_v2 }
 0x3cb   :  { %789 = vmin.xlane.f32.xlu1 %v788_v27  ;;  %v803_v55 = vsel %vm802_vm4, %v798_v54, inf  ;;  %v687_v54 = vcvt.f32.s32 %v3159_v37  ;;  %v702_v27 = vcvt.f32.s32 %v3165_v26 }
 0x3cc   :  { %804 = vmin.xlane.f32.xlu0 %v803_v55  ;;  %v3205_v0 = vpop.xlane.xlu1 %815 }
 0x3cd   :  { %v3208_v52 = vpop.xlane.xlu0 %830  ;;  %vm817_vm5 = vcmp.eq.f32.partialorder %v2998_v4, %v3205_v0  ;;  %v858_v4 = vcvt.s32.f32 %v856_v43  ;;  %v703_v43 = vshll.u32 %v702_v27, 16 }
 0x3ce   :  { %v818_v5 = vsel %vm817_vm5, %v813_v17, inf  ;;  %vm832_vm6 = vcmp.eq.f32.partialorder %v3001_v8, %v3208_v52 }
 0x3cf   :  { %819 = vmin.xlane.f32.xlu1 %v818_v5  ;;  %v833_v60 = vsel %vm832_vm6, %v828_v18, inf  ;;  %v747_v5 = vcvt.f32.s32 %v3178_v20  ;;  %v762_v20 = vcvt.f32.s32 %v3185_v19  ;;  %v792_v19 = vcvt.f32.s32 %v3195_v56 }
 0x3d0   :  { %834 = vmin.xlane.f32.xlu0 %v833_v60  ;;  %v3215_v12 = vpop.xlane.xlu1 %845 }
 0x3d1   :  { %v3218_v36 = vpop.xlane.xlu0 %860  ;;  %vm847_vm7 = vcmp.eq.f32.partialorder %v3016_v63, %v3215_v12  ;;  %v888_v63 = vcvt.s32.f32 %v886_v30 }
 0x3d2   :  { %v848_v51 = vsel %vm847_vm7, %v843_v7, inf  ;;  %vm862_vm8 = vcmp.eq.f32.partialorder %v3019_v22, %v3218_v36 }
 0x3d3   :  { %849 = vmin.xlane.f32.xlu1 %v848_v51  ;;  %v863_v8 = vsel %vm862_vm8, %v858_v4, inf  ;;  %v733_v4 = vshll.u32 %v732_v62, 16  ;;  %v748_v51 = vshll.u32 %v747_v5, 16 }
 0x3d4   :  { %864 = vmin.xlane.f32.xlu0 %v863_v8  ;;  %v3225_v61 = vpop.xlane.xlu1 %875 }
 0x3d5   :  { %v3228_v11 = vpop.xlane.xlu0 %890  ;;  %vm877_vm9 = vcmp.eq.f32.partialorder %v3033_v47, %v3225_v61  ;;  %v688_v47 = vshll.u32 %v687_v54, 16 }
 0x3d6   :  { %v878_v1 = vsel %vm877_vm9, %v873_v28, inf  ;;  %vm892_vm10 = vcmp.eq.f32.partialorder %v3035_v6, %v3228_v11  ;;  %v717_v6 = vcvt.f32.s32 %v3168_v48 }
 0x3d7   :  { %879 = vmin.xlane.f32.xlu1 %v878_v1  ;;  %v893_v22 = vsel %vm892_vm10, %v888_v63, inf }
 0x3d8   :  { %894 = vmin.xlane.f32.xlu0 %v893_v22  ;;  %v3234_v58 = vpop.xlane.xlu1 %905  ;;  %v718_v7 = vshll.u32 %v717_v6, 16 }
 0x3d9   :  { %vm907_vm11 = vcmp.eq.f32.partialorder %v3043_v45, %v3234_v58 }
 0x3da   :  { %v908_v23 = vsel %vm907_vm11, %v903_v31, inf }
 0x3db   :  { %909 = vmin.xlane.f32.xlu1 %v908_v23 }
 0x448   :  { %v685_v44 = vpop.xlane.xlu0 %684 }
 0x449   :  { %v686_v55 = vcvt.f32.s32 %v685_v44  ;;  %v763_v44 = vshll.u32 %v762_v20, 16 }
 0x44b   :  { %v689_v17 = vadd.s32 %v688_v47, %v686_v55  ;;  %v778_v55 = vshll.u32 %v777_v21, 16 }
 0x44c   :  { %v700_v18 = vpop.xlane.xlu1 %699 }
 0x44d   :  { %v701_v60 = vcvt.f32.s32 %v700_v18  ;;  %v715_v45 = vpop.xlane.xlu0 %714  ;;  %vm915_vm12 = vcmp.eq.s32.totalorder %v2526_v3, %v689_v17 }
 0x44e   :  { %v716_v37 = vcvt.f32.s32 %v715_v45  ;;  %v3245_v9 = vsel %vm915_vm12, inf, %v2766_v25 }
 0x44f   :  { %v704_v26 = vadd.s32 %v703_v43, %v701_v60  ;;  %v947_v48 = vsel %vm242_vm1, %v3245_v9, inf }
 0x450   :  { %v719_v30 = vadd.s32 %v718_v7, %v716_v37  ;;  %v730_v10 = vpop.xlane.xlu1 %729  ;;  %948 = vmin.xlane.f32.xlu0 %v947_v48  ;;  %v837_v37 = vcvt.f32.s32 %v3208_v52 }
 0x451   :  { %v731_v8 = vcvt.f32.s32 %v730_v10  ;;  %v745_v28 = vpop.xlane.xlu0 %744  ;;  %vm916_vm13 = vcmp.eq.s32.totalorder %v2526_v3, %v704_v26 }
 0x452   :  { %v746_v63 = vcvt.f32.s32 %v745_v28  ;;  %v3253_v25 = vsel %vm916_vm13, inf, %v2777_v49  ;;  %vm917_vm14 = vcmp.eq.s32.totalorder %v2526_v3, %v719_v30  ;;  %v807_v49 = vcvt.f32.s32 %v3198_v2 }
 0x453   :  { %v734_v1 = vadd.s32 %v733_v4, %v731_v8  ;;  %v950_v22 = vsel %vm242_vm1, %v3253_v25, inf  ;;  %v3259_v31 = vsel %vm917_vm14, inf, %v2781_v16  ;;  %v793_v2 = vshll.u32 %v792_v19, 16 }
 0x454   :  { %v749_v23 = vadd.s32 %v748_v51, %v746_v63  ;;  %951 = vmin.xlane.f32.xlu1 %v950_v22  ;;  %v760_v54 = vpop.xlane.xlu1 %759  ;;  %v953_v32 = vsel %vm242_vm1, %v3259_v31, inf  ;;  %v808_v60 = vshll.u32 %v807_v49, 16  ;;  %v838_v21 = vshll.u32 %v837_v37, 16 }
 0x455   :  { %v761_v47 = vcvt.f32.s32 %v760_v54  ;;  %954 = vmin.xlane.f32.xlu0 %v953_v32  ;;  %v775_v27 = vpop.xlane.xlu0 %774  ;;  %vm918_vm15 = vcmp.eq.s32.totalorder %v2526_v3, %v734_v1 }
 0x456   :  { %v776_v6 = vcvt.f32.s32 %v775_v27  ;;  %v3267_v16 = vsel %vm918_vm15, inf, %v2795_v53  ;;  %vm919_vm2 = vcmp.eq.s32.totalorder %v2526_v3, %v749_v23  ;;  %v822_v53 = vcvt.f32.s32 %v3205_v0 }
 0x457   :  { %v764_v56 = vadd.s32 %v763_v44, %v761_v47  ;;  %v956_v17 = vsel %vm242_vm1, %v3267_v16, inf  ;;  %v3273_v62 = vsel %vm919_vm2, inf, %v2799_v42  ;;  %v852_v0 = vcvt.f32.s32 %v3215_v12 }
 0x458   :  { %v779_v18 = vadd.s32 %v778_v55, %v776_v6  ;;  %957 = vmin.xlane.f32.xlu1 %v956_v17  ;;  %v790_v43 = vpop.xlane.xlu1 %789  ;;  %v959_v5 = vsel %vm242_vm1, %v3273_v62, inf  ;;  %v823_v20 = vshll.u32 %v822_v53, 16  ;;  %v897_v47 = vcvt.f32.s32 %v3228_v11 }
 0x459   :  { %v791_v45 = vcvt.f32.s32 %v790_v43  ;;  %960 = vmin.xlane.f32.xlu0 %v959_v5  ;;  %v805_v7 = vpop.xlane.xlu0 %804  ;;  %vm920_vm3 = vcmp.eq.s32.totalorder %v2526_v3, %v764_v56 }
 0x45a   :  { %v806_v26 = vcvt.f32.s32 %v805_v7  ;;  %v3281_v42 = vsel %vm920_vm3, inf, %v2813_v14  ;;  %vm921_vm4 = vcmp.eq.s32.totalorder %v2526_v3, %v779_v18  ;;  %v867_v14 = vcvt.f32.s32 %v3218_v36 }
 0x45b   :  { %v794_v48 = vadd.s32 %v793_v2, %v791_v45  ;;  %v962_v4 = vsel %vm242_vm1, %v3281_v42, inf  ;;  %v3287_v30 = vsel %vm921_vm4, inf, %v2817_v13  ;;  %v853_v36 = vshll.u32 %v852_v0, 16 }
 0x45c   :  { %v809_v10 = vadd.s32 %v808_v60, %v806_v26  ;;  %963 = vmin.xlane.f32.xlu1 %v962_v4  ;;  %v820_v51 = vpop.xlane.xlu1 %819  ;;  %v965_v52 = vsel %vm242_vm1, %v3287_v30, inf  ;;  %v868_v32 = vshll.u32 %v867_v14, 16  ;;  %v912_v18 = vcvt.f32.s32 %v3234_v58 }
 0x45d   :  { %v821_v8 = vcvt.f32.s32 %v820_v51  ;;  %966 = vmin.xlane.f32.xlu0 %v965_v52  ;;  %v835_v28 = vpop.xlane.xlu0 %834  ;;  %vm922_vm5 = vcmp.eq.s32.totalorder %v2526_v3, %v794_v48  ;;  %v898_v5 = vshll.u32 %v897_v47, 16 }
 0x45e   :  { %v836_v63 = vcvt.f32.s32 %v835_v28  ;;  %v3295_v13 = vsel %vm922_vm5, inf, %v2831_v46  ;;  %vm923_vm6 = vcmp.eq.s32.totalorder %v2526_v3, %v809_v10  ;;  %v882_v46 = vcvt.f32.s32 %v3225_v61 }
 0x45f   :  { %v824_v12 = vadd.s32 %v823_v20, %v821_v8  ;;  %v968_v1 = vsel %vm242_vm1, %v3295_v13, inf  ;;  %v3301_v22 = vsel %vm923_vm6, inf, %v2835_v29  ;;  %v913_v48 = vshll.u32 %v912_v18, 16 }
 0x460   :  { %v839_v19 = vadd.s32 %v838_v21, %v836_v63  ;;  %969 = vmin.xlane.f32.xlu1 %v968_v1  ;;  %v850_v23 = vpop.xlane.xlu1 %849  ;;  %v971_v54 = vsel %vm242_vm1, %v3301_v22, inf  ;;  %v883_v11 = vshll.u32 %v882_v46, 16 }
 0x461   :  { %v851_v44 = vcvt.f32.s32 %v850_v23  ;;  %972 = vmin.xlane.f32.xlu0 %v971_v54  ;;  %v865_v49 = vpop.xlane.xlu0 %864  ;;  %vm924_vm7 = vcmp.eq.s32.totalorder %v2526_v3, %v824_v12 }
 0x462   :  { %v866_v27 = vcvt.f32.s32 %v865_v49  ;;  %v3309_v29 = vsel %vm924_vm7, inf, %v2849_v33  ;;  %vm925_vm8 = vcmp.eq.s32.totalorder %v2526_v3, %v839_v19 }
 0x463   :  { %v854_v55 = vadd.s32 %v853_v36, %v851_v44  ;;  %v974_v6 = vsel %vm242_vm1, %v3309_v29, inf  ;;  %v3315_v56 = vsel %vm925_vm8, inf, %v2853_v40 }
 0x464   :  { %v869_v61 = vadd.s32 %v868_v32, %v866_v27  ;;  %975 = vmin.xlane.f32.xlu1 %v974_v6  ;;  %v880_v17 = vpop.xlane.xlu1 %879  ;;  %v977_v2 = vsel %vm242_vm1, %v3315_v56, inf }
 0x465   :  { %v881_v33 = vcvt.f32.s32 %v880_v17  ;;  %978 = vmin.xlane.f32.xlu0 %v977_v2  ;;  %v895_v43 = vpop.xlane.xlu0 %894  ;;  %vm926_vm9 = vcmp.eq.s32.totalorder %v2526_v3, %v854_v55 }
 0x466   :  { %v896_v60 = vcvt.f32.s32 %v895_v43  ;;  %v3322_v53 = vsel %vm926_vm9, inf, %v2866_v34  ;;  %vm927_vm10 = vcmp.eq.s32.totalorder %v2526_v3, %v869_v61 }
 0x467   :  { %v884_v40 = vadd.s32 %v883_v11, %v881_v33  ;;  %v980_v45 = vsel %vm242_vm1, %v3322_v53, inf  ;;  %v3328_v7 = vsel %vm927_vm10, inf, %v2870_v38 }
 0x468   :  { %v899_v58 = vadd.s32 %v898_v5, %v896_v60  ;;  %981 = vmin.xlane.f32.xlu1 %v980_v45  ;;  %v910_v37 = vpop.xlane.xlu1 %909  ;;  %v983_v26 = vsel %vm242_vm1, %v3328_v7, inf }
 0x469   :  { %v911_v4 = vcvt.f32.s32 %v910_v37  ;;  %984 = vmin.xlane.f32.xlu0 %v983_v26  ;;  %vm928_vm11 = vcmp.eq.s32.totalorder %v2526_v3, %v884_v40 }
 0x46a   :  { %v3334_v34 = vsel %vm928_vm11, inf, %v2882_v24  ;;  %vm929_vm12 = vcmp.eq.s32.totalorder %v2526_v3, %v899_v58 }
 0x46b   :  { %v914_v0 = vadd.s32 %v913_v48, %v911_v4  ;;  %v986_v38 = vsel %vm242_vm1, %v3334_v34, inf  ;;  %v3340_v10 = vsel %vm929_vm12, inf, %v2886_v35 }
 0x46c   :  { %987 = vmin.xlane.f32.xlu1 %v986_v38  ;;  %v989_v51 = vsel %vm242_vm1, %v3340_v10, inf }
 0x46d   :  { %990 = vmin.xlane.f32.xlu0 %v989_v51  ;;  %vm930_vm13 = vcmp.eq.s32.totalorder %v2526_v3, %v914_v0 }
 0x46e   :  { %v3346_v52 = vsel %vm930_vm13, inf, %v2897_v59 }
 0x46f   :  { %v992_v24 = vsel %vm242_vm1, %v3346_v52, inf }
 0x470   :  { %993 = vmin.xlane.f32.xlu1 %v992_v24 }
 0x4dd   :  { %v949_v20 = vpop.xlane.xlu0 %948 }
 0x4de   :  { %vm995_vm14 = vcmp.eq.f32.partialorder %v3245_v9, %v949_v20 }
 0x4df   :  { %v1011_v35 = vsel %vm995_vm14, %v2526_v3, 16 }
 0x4e0   :  { %v3353_v14 = vsel %vm242_vm1, %v1011_v35, 2147483647 }
 0x4e1   :  { %v1029_v8 = vshra.s32 %v3353_v14, 16  ;;  %v952_v28 = vpop.xlane.xlu1 %951 }
 0x4e2   :  { %vm996_vm15 = vcmp.eq.f32.partialorder %v3253_v25, %v952_v28  ;;  %v955_v21 = vpop.xlane.xlu0 %954 }
 0x4e3   :  { %v1012_v59 = vsel %vm996_vm15, %v2526_v3, 16  ;;  %vm997_vm2 = vcmp.eq.f32.partialorder %v3259_v31, %v955_v21  ;;  %v3359_v63 = vcvt.s32.f32 %v1029_v8 }
 0x4e4   :  { %v3362_v12 = vsel %vm242_vm1, %v1012_v59, 2147483647  ;;  %v1013_v9 = vsel %vm997_vm2, %v2526_v3, 16 }
 0x4e5   :  { %v1044_v1 = vshra.s32 %v3362_v12, 16  ;;  %v3367_v36 = vsel %vm242_vm1, %v1013_v9, 2147483647  ;;  %v958_v19 = vpop.xlane.xlu1 %957  ;;  %1032 = vmin.xlane.f32.xlu0 %v3359_v63 }
 0x4e6   :  { %v1059_v25 = vshra.s32 %v3367_v36, 16  ;;  %vm998_vm3 = vcmp.eq.f32.partialorder %v3267_v16, %v958_v19  ;;  %v961_v31 = vpop.xlane.xlu0 %960 }
 0x4e7   :  { %v1014_v23 = vsel %vm998_vm3, %v2526_v3, 16  ;;  %vm999_vm4 = vcmp.eq.f32.partialorder %v3273_v62, %v961_v31  ;;  %v3374_v54 = vcvt.s32.f32 %v1044_v1 }
 0x4e8   :  { %v3377_v32 = vsel %vm242_vm1, %v1014_v23, 2147483647  ;;  %v1015_v46 = vsel %vm999_vm4, %v2526_v3, 16  ;;  %v3380_v44 = vcvt.s32.f32 %v1059_v25 }
 0x4e9   :  { %v1074_v49 = vshra.s32 %v3377_v32, 16  ;;  %v3384_v47 = vsel %vm242_vm1, %v1015_v46, 2147483647  ;;  %1047 = vmin.xlane.f32.xlu1 %v3374_v54  ;;  %v964_v16 = vpop.xlane.xlu1 %963 }
 0x4ea   :  { %v1089_v27 = vshra.s32 %v3384_v47, 16  ;;  %vm1000_vm5 = vcmp.eq.f32.partialorder %v3281_v42, %v964_v16  ;;  %1062 = vmin.xlane.f32.xlu0 %v3380_v44  ;;  %v967_v62 = vpop.xlane.xlu0 %966 }
 0x4eb   :  { %v1016_v55 = vsel %vm1000_vm5, %v2526_v3, 16  ;;  %vm1001_vm6 = vcmp.eq.f32.partialorder %v3287_v30, %v967_v62  ;;  %v3392_v6 = vcvt.s32.f32 %v1074_v49 }
 0x4ec   :  { %v3395_v61 = vsel %vm242_vm1, %v1016_v55, 2147483647  ;;  %v1017_v17 = vsel %vm1001_vm6, %v2526_v3, 16  ;;  %v3398_v2 = vcvt.s32.f32 %v1089_v27 }
 0x4ed   :  { %v1104_v11 = vshra.s32 %v3395_v61, 16  ;;  %v3402_v42 = vsel %vm242_vm1, %v1017_v17, 2147483647  ;;  %1077 = vmin.xlane.f32.xlu1 %v3392_v6  ;;  %v970_v18 = vpop.xlane.xlu1 %969 }
 0x4ee   :  { %v1119_v33 = vshra.s32 %v3402_v42, 16  ;;  %vm1002_vm7 = vcmp.eq.f32.partialorder %v3295_v13, %v970_v18  ;;  %1092 = vmin.xlane.f32.xlu0 %v3398_v2  ;;  %v973_v30 = vpop.xlane.xlu0 %972 }
 0x4ef   :  { %v1018_v43 = vsel %vm1002_vm7, %v2526_v3, 16  ;;  %vm1003_vm8 = vcmp.eq.f32.partialorder %v3301_v22, %v973_v30  ;;  %v3410_v5 = vcvt.s32.f32 %v1104_v11 }
 0x4f0   :  { %v3413_v60 = vsel %vm242_vm1, %v1018_v43, 2147483647  ;;  %v1019_v40 = vsel %vm1003_vm8, %v2526_v3, 16  ;;  %v3416_v45 = vcvt.s32.f32 %v1119_v33  ;;  %v1043_v43 = vand.u32 65535, %v3362_v12 }
 0x4f1   :  { %v1134_v58 = vshra.s32 %v3413_v60, 16  ;;  %v3420_v13 = vsel %vm242_vm1, %v1019_v40, 2147483647  ;;  %1107 = vmin.xlane.f32.xlu1 %v3410_v5  ;;  %v976_v37 = vpop.xlane.xlu1 %975 }
 0x4f2   :  { %v1149_v26 = vshra.s32 %v3420_v13, 16  ;;  %vm1004_vm9 = vcmp.eq.f32.partialorder %v3309_v29, %v976_v37  ;;  %1122 = vmin.xlane.f32.xlu0 %v3416_v45  ;;  %v979_v22 = vpop.xlane.xlu0 %978  ;;  %v1058_v37 = vand.u32 65535, %v3367_v36 }
 0x4f3   :  { %v1020_v48 = vsel %vm1004_vm9, %v2526_v3, 16  ;;  %vm1005_vm10 = vcmp.eq.f32.partialorder %v3315_v56, %v979_v22  ;;  %v3428_v4 = vcvt.s32.f32 %v1134_v58  ;;  %v1073_v22 = vand.u32 65535, %v3377_v32 }
 0x4f4   :  { %v3431_v0 = vsel %vm242_vm1, %v1020_v48, 2147483647  ;;  %v1021_v38 = vsel %vm1005_vm10, %v2526_v3, 16  ;;  %v3434_v51 = vcvt.s32.f32 %v1149_v26  ;;  %v1060_v12 = vcvt.s32.f32 %v1058_v37 }
 0x4f5   :  { %v1164_v24 = vshra.s32 %v3431_v0, 16  ;;  %v3438_v29 = vsel %vm242_vm1, %v1021_v38, 2147483647  ;;  %1137 = vmin.xlane.f32.xlu1 %v3428_v4  ;;  %v982_v20 = vpop.xlane.xlu1 %981  ;;  %v1045_v38 = vcvt.s32.f32 %v1043_v43 }
 0x4f6   :  { %v1179_v35 = vshra.s32 %v3438_v29, 16  ;;  %vm1006_vm11 = vcmp.eq.f32.partialorder %v3322_v53, %v982_v20  ;;  %1152 = vmin.xlane.f32.xlu0 %v3434_v51  ;;  %v985_v56 = vpop.xlane.xlu0 %984  ;;  %v1103_v20 = vand.u32 65535, %v3395_v61  ;;  %v1133_v61 = vand.u32 65535, %v3413_v60 }
 0x4f7   :  { %v1022_v8 = vsel %vm1006_vm11, %v2526_v3, 16  ;;  %vm1007_vm12 = vcmp.eq.f32.partialorder %v3328_v7, %v985_v56  ;;  %v3446_v28 = vcvt.s32.f32 %v1164_v24  ;;  %v1088_v24 = vand.u32 65535, %v3384_v47 }
 0x4f8   :  { %v3449_v21 = vsel %vm242_vm1, %v1022_v8, 2147483647  ;;  %v1023_v59 = vsel %vm1007_vm12, %v2526_v3, 16  ;;  %v3452_v9 = vcvt.s32.f32 %v1179_v35  ;;  %v1075_v35 = vcvt.s32.f32 %v1073_v22 }
 0x4f9   :  { %v1194_v1 = vshra.s32 %v3449_v21, 16  ;;  %v3456_v53 = vsel %vm242_vm1, %v1023_v59, 2147483647  ;;  %1167 = vmin.xlane.f32.xlu1 %v3446_v28  ;;  %v988_v19 = vpop.xlane.xlu1 %987  ;;  %v1118_v47 = vand.u32 65535, %v3402_v42  ;;  %v1090_v56 = vcvt.s32.f32 %v1088_v24  ;;  %v3578_v24 = vld [vmem:[%s3794_s0 + $0x10] sm:$0xff] }
 0x4fa   :  { %v1209_v25 = vshra.s32 %v3456_v53, 16  ;;  %vm1008_vm13 = vcmp.eq.f32.partialorder %v3334_v34, %v988_v19  ;;  %1182 = vmin.xlane.f32.xlu0 %v3452_v9  ;;  %v991_v7 = vpop.xlane.xlu0 %990  ;;  %v1148_v42 = vand.u32 65535, %v3420_v13  ;;  %v1163_v60 = vand.u32 65535, %v3431_v0 }
 0x4fb   :  { %v1024_v31 = vsel %vm1008_vm13, %v2526_v3, 16  ;;  %vm1009_vm14 = vcmp.eq.f32.partialorder %v3340_v10, %v991_v7  ;;  %v3464_v23 = vcvt.s32.f32 %v1194_v1  ;;  %v1105_v1 = vcvt.s32.f32 %v1103_v20 }
 0x4fc   :  { %v3467_v46 = vsel %vm242_vm1, %v1024_v31, 2147483647  ;;  %v1025_v49 = vsel %vm1009_vm14, %v2526_v3, 16  ;;  %v3470_v16 = vcvt.s32.f32 %v1209_v25  ;;  %v1120_v19 = vcvt.s32.f32 %v1118_v47 }
 0x4fd   :  { %v1224_v27 = vshra.s32 %v3467_v46, 16  ;;  %v3474_v34 = vsel %vm242_vm1, %v1025_v49, 2147483647  ;;  %1197 = vmin.xlane.f32.xlu1 %v3464_v23  ;;  %v994_v62 = vpop.xlane.xlu1 %993  ;;  %v1135_v31 = vcvt.s32.f32 %v1133_v61  ;;  %v1178_v13 = vand.u32 65535, %v3438_v29 }
 0x4fe   :  { %v1239_v55 = vshra.s32 %v3474_v34, 16  ;;  %vm1010_vm15 = vcmp.eq.f32.partialorder %v3346_v52, %v994_v62  ;;  %1212 = vmin.xlane.f32.xlu0 %v3470_v16  ;;  %v1028_v52 = vand.u32 65535, %v3353_v14  ;;  %v1150_v49 = vcvt.s32.f32 %v1148_v42 }
 0x4ff   :  { %v1026_v10 = vsel %vm1010_vm15, %v2526_v3, 16  ;;  %v3481_v17 = vcvt.s32.f32 %v1224_v27  ;;  %v1193_v0 = vand.u32 65535, %v3449_v21  ;;  %v1208_v29 = vand.u32 65535, %v3456_v53 }
 0x500   :  { %v3484_v11 = vsel %vm242_vm1, %v1026_v10, 2147483647  ;;  %v3486_v18 = vcvt.s32.f32 %v1239_v55  ;;  %v1030_v58 = vcvt.s32.f32 %v1028_v52  ;;  %v1165_v55 = vcvt.s32.f32 %v1163_v60 }
 0x501   :  { %v1254_v33 = vshra.s32 %v3484_v11, 16  ;;  %1227 = vmin.xlane.f32.xlu1 %v3481_v17  ;;  %v1180_v10 = vcvt.s32.f32 %v1178_v13  ;;  %v1223_v21 = vand.u32 65535, %v3467_v46  ;;  %v1195_v43 = vcvt.s32.f32 %v1193_v0  ;;  %v3564_v46 = vld [vmem:[%s3794_s0 + $0x8] sm:$0xff]  ;;  %v3826_v13 = vld [vmem:[#allocation7_spill] sm:$0xff]  ;;  %v3827_v0 = vld [vmem:[#allocation6_spill] sm:$0xff] }
 0x502   :  { %1242 = vmin.xlane.f32.xlu0 %v3486_v18  ;;  %v1238_v53 = vand.u32 65535, %v3474_v34  ;;  %v1833_v37 = vsub.f32 %v3046_v57, %v3564_v46  ;;  %v1834_v57 = vsub.f32 %v3067_v50, %v3578_v24 }
 0x503   :  { %v3491_v30 = vcvt.s32.f32 %v1254_v33  ;;  %v1225_v22 = vcvt.s32.f32 %v1223_v21  ;;  %v3828_v21 = vld [vmem:[#allocation9_spill] sm:$0xff] }
 0x504   :  { %v1866_v50 = vmul.f32 %v1834_v57, %v1834_v57 }
 0x505   :  { %1257 = vmin.xlane.f32.xlu1 %v3491_v30 }
 0x572   :  { %v3496_v40 = vpop.xlane.xlu0 %1032 }
 0x573   :  { %vm1034_vm2 = vcmp.eq.f32.partialorder %v3359_v63, %v3496_v40 }
 0x574   :  { %v1035_v26 = vsel %vm1034_vm2, %v1030_v58, inf  ;;  %v1210_v58 = vcvt.s32.f32 %v1208_v29 }
 0x575   :  { %1036 = vmin.xlane.f32.xlu0 %v1035_v26  ;;  %v1253_v26 = vand.u32 65535, %v3484_v11 }
 0x576   :  { %v3502_v48 = vpop.xlane.xlu1 %1047 }
 0x577   :  { %vm1049_vm3 = vcmp.eq.f32.partialorder %v3374_v54, %v3502_v48  ;;  %v3507_v14 = vpop.xlane.xlu0 %1062 }
 0x578   :  { %vm1064_vm4 = vcmp.eq.f32.partialorder %v3380_v44, %v3507_v14  ;;  %v1050_v36 = vsel %vm1049_vm3, %v1045_v38, inf  ;;  %v1240_v38 = vcvt.s32.f32 %v1238_v53 }
 0x579   :  { %1051 = vmin.xlane.f32.xlu1 %v1050_v36  ;;  %v1065_v63 = vsel %vm1064_vm4, %v1060_v12, inf  ;;  %v1865_v12 = vmul.f32 %v1833_v37, %v1833_v37 }
 0x57a   :  { %1066 = vmin.xlane.f32.xlu0 %v1065_v63  ;;  %v3512_v32 = vpop.xlane.xlu1 %1077 }
 0x57b   :  { %vm1079_vm5 = vcmp.eq.f32.partialorder %v3392_v6, %v3512_v32  ;;  %v3517_v54 = vpop.xlane.xlu0 %1092 }
 0x57c   :  { %vm1094_vm6 = vcmp.eq.f32.partialorder %v3398_v2, %v3517_v54  ;;  %v1080_v44 = vsel %vm1079_vm5, %v1075_v35, inf  ;;  %v1255_v35 = vcvt.s32.f32 %v1253_v26 }
 0x57d   :  { %1081 = vmin.xlane.f32.xlu1 %v1080_v44  ;;  %v1095_v8 = vsel %vm1094_vm6, %v1090_v56, inf  ;;  %v3598_v56 = vld [vmem:[%s3794_s0 + $0x18] sm:$0xff]  ;;  %v1883_v44 = vsel %vm46_vm0, %v1865_v12, 0.0 }
 0x57e   :  { %1096 = vmin.xlane.f32.xlu0 %v1095_v8  ;;  %v3522_v59 = vpop.xlane.xlu1 %1107  ;;  %v1886_v8 = vsel %vm46_vm0, %v1866_v50, 0.0  ;;  %v1099_v50 = vcvt.f32.s32 %v3517_v54 }
 0x57f   :  { %vm1109_vm7 = vcmp.eq.f32.partialorder %v3410_v5, %v3522_v59  ;;  %v3527_v6 = vpop.xlane.xlu0 %1122 }
 0x580   :  { %vm1124_vm8 = vcmp.eq.f32.partialorder %v3416_v45, %v3527_v6  ;;  %v1110_v2 = vsel %vm1109_vm7, %v1105_v1, inf }
 0x581   :  { %1111 = vmin.xlane.f32.xlu1 %v1110_v2  ;;  %v1125_v25 = vsel %vm1124_vm8, %v1120_v19, inf  ;;  %v3825_v19 = vld [vmem:[#allocation5_spill] sm:$0xff] }
 0x582   :  { %1126 = vmin.xlane.f32.xlu0 %v1125_v25  ;;  %v3532_v7 = vpop.xlane.xlu1 %1137 }
 0x583   :  { %vm1139_vm9 = vcmp.eq.f32.partialorder %v3428_v4, %v3532_v7  ;;  %v3537_v5 = vpop.xlane.xlu0 %1152 }
 0x584   :  { %vm1154_vm10 = vcmp.eq.f32.partialorder %v3434_v51, %v3537_v5  ;;  %v1140_v45 = vsel %vm1139_vm9, %v1135_v31, inf }
 0x585   :  { %1141 = vmin.xlane.f32.xlu1 %v1140_v45  ;;  %v1155_v27 = vsel %vm1154_vm10, %v1150_v49, inf }
 0x586   :  { %1156 = vmin.xlane.f32.xlu0 %v1155_v27  ;;  %v3542_v62 = vpop.xlane.xlu1 %1167  ;;  %v3631_v27 = vld [vmem:[%s3794_s0 + $0x38] sm:$0xff] }
 0x587   :  { %vm1169_vm11 = vcmp.eq.f32.partialorder %v3446_v28, %v3542_v62  ;;  %v3547_v4 = vpop.xlane.xlu0 %1182 }
 0x588   :  { %vm1184_vm12 = vcmp.eq.f32.partialorder %v3452_v9, %v3547_v4  ;;  %v1170_v51 = vsel %vm1169_vm11, %v1165_v55, inf  ;;  %v1839_v55 = vsub.f32 %v3827_v0, %v3631_v27 }
 0x589   :  { %1171 = vmin.xlane.f32.xlu1 %v1170_v51  ;;  %v1185_v33 = vsel %vm1184_vm12, %v1180_v10, inf }
 0x58a   :  { %1186 = vmin.xlane.f32.xlu0 %v1185_v33  ;;  %v3552_v52 = vpop.xlane.xlu1 %1197  ;;  %v1871_v51 = vmul.f32 %v1839_v55, %v1839_v55  ;;  %v3639_v33 = vld [vmem:[%s3794_s0 + $0x40] sm:$0xff]  ;;  %v1159_v55 = vcvt.f32.s32 %v3537_v5 }
 0x58b   :  { %vm1199_vm13 = vcmp.eq.f32.partialorder %v3464_v23, %v3552_v52  ;;  %v3557_v28 = vpop.xlane.xlu0 %1212 }
 0x58c   :  { %vm1214_vm14 = vcmp.eq.f32.partialorder %v3470_v16, %v3557_v28  ;;  %v1200_v9 = vsel %vm1199_vm13, %v1195_v43, inf  ;;  %v1840_v43 = vsub.f32 %v3828_v21, %v3639_v33  ;;  %v1160_v5 = vshll.u32 %v1159_v55, 16 }
 0x58d   :  { %1201 = vmin.xlane.f32.xlu1 %v1200_v9  ;;  %v1215_v34 = vsel %vm1214_vm14, %v1210_v58, inf  ;;  %v1901_v9 = vsel %vm46_vm0, %v1871_v51, 0.0 }
 0x58e   :  { %1216 = vmin.xlane.f32.xlu0 %v1215_v34  ;;  %v3569_v23 = vpop.xlane.xlu1 %1227  ;;  %v1872_v58 = vmul.f32 %v1840_v43, %v1840_v43  ;;  %v1039_v34 = vcvt.f32.s32 %v3496_v40 }
 0x58f   :  { %vm1229_vm15 = vcmp.eq.f32.partialorder %v3481_v17, %v3569_v23  ;;  %v3573_v16 = vpop.xlane.xlu0 %1242  ;;  %v3587_v17 = vld [vmem:[%s3794_s0] sm:$0xff] }
 0x590   :  { %vm1244_vm2 = vcmp.eq.f32.partialorder %v3486_v18, %v3573_v16  ;;  %v1230_v11 = vsel %vm1229_vm15, %v1225_v22, inf  ;;  %v1832_v36 = vsub.f32 %v3053_v39, %v3587_v17  ;;  %v1835_v39 = vsub.f32 %v3060_v15, %v3598_v56  ;;  %v3615_v15 = vld [vmem:[%s3794_s0 + $0x28] sm:$0xff] }
 0x591   :  { %1231 = vmin.xlane.f32.xlu1 %v1230_v11  ;;  %v1245_v63 = vsel %vm1244_vm2, %v1240_v38, inf  ;;  %v1837_v2 = vsub.f32 %v3825_v19, %v3615_v15  ;;  %v1904_v37 = vsel %vm46_vm0, %v1872_v58, 0.0  ;;  %v1040_v22 = vshll.u32 %v1039_v34, 16 }
 0x592   :  { %1246 = vmin.xlane.f32.xlu0 %v1245_v63  ;;  %v3591_v20 = vpop.xlane.xlu1 %1257  ;;  %v1864_v47 = vmul.f32 %v1832_v36, %v1832_v36  ;;  %v1867_v61 = vmul.f32 %v1835_v39, %v1835_v39  ;;  %v1054_v38 = vcvt.f32.s32 %v3502_v48  ;;  %v1069_v11 = vcvt.f32.s32 %v3507_v14 }
 0x593   :  { %vm1259_vm3 = vcmp.eq.f32.partialorder %v3491_v30, %v3591_v20  ;;  %v3607_v30 = vld [vmem:[%s3794_s0 + $0x20] sm:$0xff]  ;;  %v1869_v31 = vmul.f32 %v1837_v2, %v1837_v2  ;;  %v1084_v36 = vcvt.f32.s32 %v3512_v32  ;;  %v1114_v32 = vcvt.f32.s32 %v3522_v59 }
 0x594   :  { %v1260_v18 = vsel %vm1259_vm3, %v1255_v35, inf  ;;  %v1836_v1 = vsub.f32 %v3081_v41, %v3607_v30  ;;  %v1880_v42 = vsel %vm46_vm0, %v1864_v47, 0.0  ;;  %v1889_v60 = vsel %vm46_vm0, %v1867_v61, 0.0  ;;  %v3623_v41 = vld [vmem:[%s3794_s0 + $0x30] sm:$0xff] }
 0x595   :  { %1261 = vmin.xlane.f32.xlu1 %v1260_v18  ;;  %v1838_v49 = vsub.f32 %v3826_v13, %v3623_v41  ;;  %v1895_v10 = vsel %vm46_vm0, %v1869_v31, 0.0  ;;  %v1055_v35 = vshll.u32 %v1054_v38, 16  ;;  %v1070_v39 = vshll.u32 %v1069_v11, 16 }
 0x596   :  { %1884 = vadd.xlane.f32.xlu0 %v1883_v44  ;;  %v1868_v25 = vmul.f32 %v1836_v1, %v1836_v1  ;;  %v3829_v44 = vmov 0.0   ;;  %v1085_v48 = vshll.u32 %v1084_v36, 16  ;;  %v1129_v2 = vcvt.f32.s32 %v3527_v6 }
 0x597   :  { %v1870_v29 = vmul.f32 %v1838_v49, %v1838_v49  ;;  %v1144_v49 = vcvt.f32.s32 %v3532_v7  ;;  %v1115_v0 = vshll.u32 %v1114_v32, 16  ;;  %v1204_v36 = vcvt.f32.s32 %v3552_v52 }
 0x598   :  { %v1892_v45 = vsel %vm46_vm0, %v1868_v25, 0.0 }
 0x599   :  { %1887 = vadd.xlane.f32.xlu1 %v1886_v8  ;;  %v1898_v53 = vsel %vm46_vm0, %v1870_v29, 0.0 }
 0x59a   :  { %1881 = vadd.xlane.f32.xlu0 %v1880_v42  ;;  %v1100_v42 = vshll.u32 %v1099_v50, 16  ;;  %v1219_v50 = vcvt.f32.s32 %v3557_v28 }
 0x59c   :  { %v1220_v28 = vshll.u32 %v1219_v50, 16  ;;  %v3831_v50 = vld [vmem:[#allocation11_spill] sm:$0xff] }
 0x59e   :  { %1890 = vadd.xlane.f32.xlu0 %v1889_v60 }
 0x5a2   :  { %1893 = vadd.xlane.f32.xlu0 %v1892_v45 }
 0x5a6   :  { %1896 = vadd.xlane.f32.xlu0 %v1895_v10  ;;  %v1130_v10 = vshll.u32 %v1129_v2, 16 }
 0x5aa   :  { %1899 = vadd.xlane.f32.xlu0 %v1898_v53  ;;  %v1145_v53 = vshll.u32 %v1144_v49, 16  ;;  %v1264_v49 = vcvt.f32.s32 %v3591_v20 }
 0x5ac   :  { %v1265_v20 = vshll.u32 %v1264_v49, 16 }
 0x5ae   :  { %1902 = vadd.xlane.f32.xlu0 %v1901_v9 }
 0x5b2   :  { %1905 = vadd.xlane.f32.xlu0 %v1904_v37  ;;  %v1174_v37 = vcvt.f32.s32 %v3542_v62 }
 0x602   :  { %v1037_v26 = vpop.xlane.xlu0 %1036 }
 0x603   :  { %v1038_v57 = vcvt.f32.s32 %v1037_v26 }
 0x605   :  { %v1041_v12 = vadd.s32 %v1040_v22, %v1038_v57  ;;  %v1189_v22 = vcvt.f32.s32 %v3547_v4 }
 0x606   :  { %v1052_v63 = vpop.xlane.xlu1 %1051 }
 0x607   :  { %v1053_v18 = vcvt.f32.s32 %v1052_v63  ;;  %v1067_v47 = vpop.xlane.xlu0 %1066  ;;  %vm1267_vm4 = vcmp.eq.s32.totalorder %v2526_v3, %v1041_v12 }
 0x608   :  { %v1068_v40 = vcvt.f32.s32 %v1067_v47  ;;  %v2123_v8 = vsel %vm1267_vm4, 1.0, %v3829_v44  ;;  %v1190_v47 = vshll.u32 %v1189_v22, 16 }
 0x609   :  { %v1056_v61 = vadd.s32 %v1055_v35, %v1053_v18  ;;  %2283 = vmatprep.mubr.msk.f32.mxu0 %vm242_vm1, %v2123_v8  ;;  %v1175_v35 = vshll.u32 %v1174_v37, 16 }
 0x60a   :  { %v1071_v14 = vadd.s32 %v1070_v39, %v1068_v40  ;;  %v1082_v1 = vpop.xlane.xlu1 %1081 }
 0x60b   :  { %vm1268_vm5 = vcmp.eq.s32.totalorder %v2526_v3, %v1056_v61  ;;  %v1083_v54 = vcvt.f32.s32 %v1082_v1  ;;  %v1097_v19 = vpop.xlane.xlu0 %1096  ;;  %v1205_v61 = vshll.u32 %v1204_v36, 16  ;;  %v1234_v1 = vcvt.f32.s32 %v3569_v23 }
 0x60c   :  { %v2124_v25 = vsel %vm1268_vm5, 1.0, %v3829_v44  ;;  %v1098_v60 = vcvt.f32.s32 %v1097_v19  ;;  %vm1269_vm6 = vcmp.eq.s32.totalorder %v2526_v3, %v1071_v14 }
 0x60d   :  { %v1086_v31 = vadd.s32 %v1085_v48, %v1083_v54  ;;  %2284 = vmatmul.mubr.msk.f32.vlgmr.msra.gmra.mrb[8].mxu0 %vm242_vm1, %v2124_v25  ;;  %v2125_v13 = vsel %vm1269_vm6, 1.0, %v3829_v44  ;;  %v1249_v54 = vcvt.f32.s32 %v3573_v16  ;;  %v1235_v23 = vshll.u32 %v1234_v1, 16 }
 0x60e   :  { %v1101_v45 = vadd.s32 %v1100_v42, %v1098_v60  ;;  %v1112_v59 = vpop.xlane.xlu1 %1111  ;;  %2286 = vmatprep.mubr.msk.f32.mxu0 %vm242_vm1, %v2125_v13  ;;  %vm2068_vm6 = vcmp.eq.s32.totalorder %v2526_v3, 1 }
 0x60f   :  { %v1113_v6 = vcvt.f32.s32 %v1112_v59  ;;  %v1127_v29 = vpop.xlane.xlu0 %1126  ;;  %vm1270_vm7 = vcmp.eq.s32.totalorder %v2526_v3, %v1086_v31  ;;  %v1250_v16 = vshll.u32 %v1249_v54, 16 }
 0x610   :  { %v1128_v51 = vcvt.f32.s32 %v1127_v29  ;;  %v2126_v21 = vsel %vm1270_vm7, 1.0, %v3829_v44  ;;  %vm1271_vm8 = vcmp.eq.s32.totalorder %v2526_v3, %v1101_v45 }
 0x611   :  { %v1116_v43 = vadd.s32 %v1115_v0, %v1113_v6  ;;  %2287 = vmatmul.mubr.msk.f32.gmra.mrb[10].mxu0 %vm242_vm1, %v2126_v21  ;;  %v2127_v7 = vsel %vm1271_vm8, 1.0, %v3829_v44 }
 0x612   :  { %v1131_v58 = vadd.s32 %v1130_v10, %v1128_v51  ;;  %v1142_v9 = vpop.xlane.xlu1 %1141  ;;  %2289 = vmatprep.mubr.msk.f32.mxu0 %vm242_vm1, %v2127_v7 }
 0x613   :  { %v1143_v34 = vcvt.f32.s32 %v1142_v9  ;;  %v1157_v26 = vpop.xlane.xlu0 %1156  ;;  %vm1272_vm9 = vcmp.eq.s32.totalorder %v2526_v3, %v1116_v43 }
 0x614   :  { %v1158_v38 = vcvt.f32.s32 %v1157_v26  ;;  %v2128_v57 = vsel %vm1272_vm9, 1.0, %v3829_v44  ;;  %vm1273_vm10 = vcmp.eq.s32.totalorder %v2526_v3, %v1131_v58  ;;  %v3830_v26 = vld [vmem:[#allocation8_spill] sm:$0xff] }
 0x615   :  { %v1146_v11 = vadd.s32 %v1145_v53, %v1143_v34  ;;  %2290 = vmatmul.mubr.msk.f32.gmra.mrb[12].mxu0 %vm242_vm1, %v2128_v57  ;;  %v2129_v12 = vsel %vm1273_vm10, 1.0, %v3829_v44  ;;  %v3714_v34 = vld [vmem:[%s3794_s0 + $0x48] sm:$0xff] }
 0x616   :  { %v1161_v63 = vadd.s32 %v1160_v5, %v1158_v38  ;;  %v1172_v62 = vpop.xlane.xlu1 %1171  ;;  %2292 = vmatprep.mubr.msk.f32.mxu0 %vm242_vm1, %v2129_v12  ;;  %v1841_v22 = vsub.f32 %v3830_v26, %v3714_v34 }
 0x617   :  { %v1173_v4 = vcvt.f32.s32 %v1172_v62  ;;  %v1187_v18 = vpop.xlane.xlu0 %1186  ;;  %vm1274_vm11 = vcmp.eq.s32.totalorder %v2526_v3, %v1146_v11 }
 0x618   :  { %v1188_v39 = vcvt.f32.s32 %v1187_v18  ;;  %v2130_v40 = vsel %vm1274_vm11, 1.0, %v3829_v44  ;;  %vm1275_vm12 = vcmp.eq.s32.totalorder %v2526_v3, %v1161_v63 }
 0x619   :  { %v1176_v8 = vadd.s32 %v1175_v35, %v1173_v4  ;;  %2293 = vmatmul.mubr.msk.f32.gmra.mrb[14].mxu0 %vm242_vm1, %v2130_v40  ;;  %v2131_v52 = vsel %vm1275_vm12, 1.0, %v3829_v44  ;;  %v3724_v35 = vld [vmem:[%s3794_s0 + $0x50] sm:$0xff] }
 0x61a   :  { %v1191_v48 = vadd.s32 %v1190_v47, %v1188_v39  ;;  %v1202_v14 = vpop.xlane.xlu1 %1201  ;;  %2295 = vmatprep.mubr.msk.f32.mxu0 %vm242_vm1, %v2131_v52  ;;  %v1842_v4 = vsub.f32 %v3831_v50, %v3724_v35 }
 0x61b   :  { %v1203_v42 = vcvt.f32.s32 %v1202_v14  ;;  %v1217_v32 = vpop.xlane.xlu0 %1216  ;;  %vm1276_vm13 = vcmp.eq.s32.totalorder %v2526_v3, %v1176_v8 }
 0x61c   :  { %v1218_v19 = vcvt.f32.s32 %v1217_v32  ;;  %v2132_v2 = vsel %vm1276_vm13, 1.0, %v3829_v44  ;;  %vm1277_vm14 = vcmp.eq.s32.totalorder %v2526_v3, %v1191_v48  ;;  %v3832_v48 = vld [vmem:[#allocation10_spill] sm:$0xff] }
 0x61d   :  { %v1206_v25 = vadd.s32 %v1205_v61, %v1203_v42  ;;  %2296 = vmatmul.mubr.msk.f32.gmra.mrb[16].mxu0 %vm242_vm1, %v2132_v2  ;;  %v2133_v60 = vsel %vm1277_vm14, 1.0, %v3829_v44  ;;  %v2330_v61 = vld [vmem:[%s3794_s0 + $0x58] sm:$0xff]  ;;  %v2331_v2 = vld [vmem:[%s3794_s0 + $0x60] sm:$0xff] }
 0x61e   :  { %v1221_v31 = vadd.s32 %v1220_v28, %v1218_v19  ;;  %v1232_v13 = vpop.xlane.xlu1 %1231  ;;  %2298 = vmatprep.mubr.msk.f32.mxu0 %vm242_vm1, %v2133_v60  ;;  %v1843_v14 = vsub.f32 %v3832_v48, %v2330_v61  ;;  %v1874_v28 = vmul.f32 %v1842_v4, %v1842_v4 }
 0x61f   :  { %v1233_v45 = vcvt.f32.s32 %v1232_v13  ;;  %v1247_v59 = vpop.xlane.xlu0 %1246  ;;  %vm1278_vm15 = vcmp.eq.s32.totalorder %v2526_v3, %v1206_v25  ;;  %v3833_v25 = vld [vmem:[#allocation13_spill] sm:$0xff] }
 0x620   :  { %v1248_v0 = vcvt.f32.s32 %v1247_v59  ;;  %v2134_v55 = vsel %vm1278_vm15, 1.0, %v3829_v44  ;;  %vm1279_vm2 = vcmp.eq.s32.totalorder %v2526_v3, %v1221_v31  ;;  %v1875_v19 = vmul.f32 %v1843_v14, %v1843_v14  ;;  %v2332_v59 = vld [vmem:[%s3794_s0 + $0x68] sm:$0xff] }
 0x621   :  { %v1236_v6 = vadd.s32 %v1235_v23, %v1233_v45  ;;  %2299 = vmatmul.mubr.msk.f32.gmra.mrb[18].mxu0 %vm242_vm1, %v2134_v55  ;;  %v2135_v29 = vsel %vm1279_vm2, 1.0, %v3829_v44  ;;  %v1844_v60 = vsub.f32 %v3833_v25, %v2331_v2  ;;  %v1910_v31 = vsel %vm46_vm0, %v1874_v28, 0.0 }
 0x622   :  { %v1251_v10 = vadd.s32 %v1250_v16, %v1248_v0  ;;  %v1262_v51 = vpop.xlane.xlu1 %1261  ;;  %2301 = vmatprep.mubr.msk.f32.mxu0 %vm242_vm1, %v2135_v29  ;;  %v3834_v16 = vld [vmem:[#allocation12_spill] sm:$0xff] }
 0x623   :  { %v1263_v21 = vcvt.f32.s32 %v1262_v51  ;;  %vm1280_vm3 = vcmp.eq.s32.totalorder %v2526_v3, %v1236_v6  ;;  %v1845_v0 = vsub.f32 %v3834_v16, %v2332_v59  ;;  %v1876_v55 = vmul.f32 %v1844_v60, %v1844_v60 }
 0x624   :  { %v2136_v43 = vsel %vm1280_vm3, 1.0, %v3829_v44  ;;  %vm1281_vm4 = vcmp.eq.s32.totalorder %v2526_v3, %v1251_v10  ;;  %v1913_v6 = vsel %vm46_vm0, %v1875_v19, 0.0  ;;  %v3837_v16 = vlaneseq }
 0x625   :  { %v1266_v7 = vadd.s32 %v1265_v20, %v1263_v21  ;;  %2302 = vmatmul.mubr.msk.f32.gmra.mrb[20].mxu0 %vm242_vm1, %v2136_v43  ;;  %v2137_v53 = vsel %vm1281_vm4, 1.0, %v3829_v44  ;;  %v1877_v21 = vmul.f32 %v1845_v0, %v1845_v0  ;;  %v2333_v43 = vld [vmem:[%s3794_s0 + $0x70] sm:$0xff] }
 0x626   :  { %2304 = vmatprep.mubr.msk.f32.mxu0 %vm242_vm1, %v2137_v53  ;;  %v1750_v0 = vshrl.u32 %v3837_v16, 7 }
 0x627   :  { %vm1282_vm5 = vcmp.eq.s32.totalorder %v2526_v3, %v1266_v7  ;;  %v3835_v7 = vld [vmem:[#allocation15_spill] sm:$0xff] }
 0x628   :  { %v2138_v58 = vsel %vm1282_vm5, 1.0, %v3829_v44  ;;  %v1846_v53 = vsub.f32 %v3835_v7, %v2333_v43 }
 0x629   :  { %2305 = vmatmul.mubr.msk.f32.gmra.mrb[22].mxu0 %vm242_vm1, %v2138_v58  ;;  %v1916_v58 = vsel %vm46_vm0, %v1876_v55, 0.0 }
 0x6e0   :  { %v2285_v9 = vpop.f32.mrb[8].mxu0 }
 0x6e1   :  { %v1849_v5 = vsub.f32 %v2285_v9, %v3564_v46  ;;  %v1654_v37 = vpop.f32.mrb[9].mxu0  ;;  %v1873_v46 = vmul.f32 %v1841_v22, %v1841_v22  ;;  %v2334_v22 = vld [vmem:[%s3794_s0 + $0x78] sm:$0xff]  ;;  %s2360_s0 = smov [#allocation2]  }
 0x6e2   :  { %v1848_v38 = vsub.f32 %v1654_v37, %v3587_v17  ;;  %s2080_s10 = sshll.u32 %s2360_s0, 4  ;;  %s2081_s10 = int_to_ptr.vmem [resolvable:$true] %s2080_s10 }
 0x6e3   :  { %v1966_v57 = vmul.f32 %v1849_v5, %v1849_v5  ;;  %s2335_s11 = scalar_lea.vmem %s2081_s10, 128  ;;  %p2340_p1 = scmp.lt.s32.totalorder %s2081_s10, %s2081_s10 }
 0x6e4   :  { %v1965_v11 = vmul.f32 %v1848_v38, %v1848_v38  ;;  %v2288_v12 = vpop.f32.mrb[10].mxu0  ;;  %v3836_v38 = vld [vmem:[#allocation14_spill] sm:$0xff]  ;;  %p2336_p0 = scmp.ne.s32.totalorder %s2081_s10, %s2335_s11  ;;  %p2341_p2 = scmp.lt.s32.totalorder %s2335_s11, %s2335_s11 }
 0x6e5   :  { %v1851_v36 = vsub.f32 %v2288_v12, %v3598_v56  ;;  %v1664_v63 = vpop.f32.mrb[11].mxu0  ;;  %v1984_v62 = vsel %vm46_vm0, %v1966_v57, 0.0  ;;  %v1847_v57 = vsub.f32 %v3836_v38, %v2334_v22  ;;  %v1919_v12 = vsel %vm46_vm0, %v1877_v21, 0.0 }
 0x6e6   :  { %v1850_v18 = vsub.f32 %v1664_v63, %v3578_v24  ;;  %1985 = vadd.xlane.f32.xlu1 %v1984_v62  ;;  %v1981_v17 = vsel %vm46_vm0, %v1965_v11, 0.0  ;;  %v1907_v24 = vsel %vm46_vm0, %v1873_v46, 0.0  ;;  %v1878_v11 = vmul.f32 %v1846_v53, %v1846_v53  ;;  %p2342_p3 = por %p2341_p2, %p2340_p1 }
 0x6e7   :  { %v1968_v47 = vmul.f32 %v1851_v36, %v1851_v36  ;;  %1982 = vadd.xlane.f32.xlu0 %v1981_v17  ;;  %v1879_v50 = vmul.f32 %v1847_v57, %v1847_v57 }
 0x6e8   :  { %v2291_v56 = vpop.f32.mrb[12].mxu0  ;;  %v1967_v39 = vmul.f32 %v1850_v18, %v1850_v18  ;;  %v1922_v4 = vsel %vm46_vm0, %v1878_v11, 0.0  ;;  %p2343_p4 = pnand %p2342_p3, %p2336_p0 }
 0x6e9   :  { %v1853_v40 = vsub.f32 %v2291_v56, %v3615_v15  ;;  %v1674_v8 = vpop.f32.mrb[13].mxu0  ;;  %v1990_v52 = vsel %vm46_vm0, %v1968_v47, 0.0  ;;  %v1925_v56 = vsel %vm46_vm0, %v1879_v50, 0.0 }
 0x6ea   :  { %1991 = vadd.xlane.f32.xlu1 %v1990_v52  ;;  %v1852_v32 = vsub.f32 %v1674_v8, %v3607_v30  ;;  %v1987_v15 = vsel %vm46_vm0, %v1967_v39, 0.0 }
 0x6eb   :  { %1908 = vadd.xlane.f32.xlu0 %v1907_v24  ;;  %v1970_v42 = vmul.f32 %v1853_v40, %v1853_v40 }
 0x6ec   :  { %v2294_v1 = vpop.f32.mrb[14].mxu0  ;;  %v1969_v23 = vmul.f32 %v1852_v32, %v1852_v32 }
 0x6ed   :  { %v1684_v54 = vpop.f32.mrb[15].mxu0  ;;  %v1855_v49 = vsub.f32 %v2294_v1, %v3631_v27  ;;  %v1996_v30 = vsel %vm46_vm0, %v1970_v42, 0.0 }
 0x6ee   :  { %1988 = vadd.xlane.f32.xlu1 %v1987_v15  ;;  %v1854_v51 = vsub.f32 %v1684_v54, %v3623_v41  ;;  %v1993_v27 = vsel %vm46_vm0, %v1969_v23, 0.0 }
 0x6ef   :  { %1911 = vadd.xlane.f32.xlu0 %v1910_v31  ;;  %v1972_v10 = vmul.f32 %v1855_v49, %v1855_v49 }
 0x6f0   :  { %v2297_v13 = vpop.f32.mrb[16].mxu0  ;;  %v1971_v5 = vmul.f32 %v1854_v51, %v1854_v51 }
 0x6f1   :  { %v1694_v45 = vpop.f32.mrb[17].mxu0  ;;  %v1857_v37 = vsub.f32 %v2297_v13, %v3714_v34  ;;  %v2002_v41 = vsel %vm46_vm0, %v1972_v10, 0.0 }
 0x6f2   :  { %1997 = vadd.xlane.f32.xlu1 %v1996_v30  ;;  %v1856_v62 = vsub.f32 %v1694_v45, %v3639_v33  ;;  %v1999_v34 = vsel %vm46_vm0, %v1971_v5, 0.0  ;;  %v1888_v30 = vpop.xlane.xlu1 %1887 }
 0x6f3   :  { %1914 = vadd.xlane.f32.xlu0 %v1913_v6  ;;  %v1974_v63 = vmul.f32 %v1857_v37, %v1857_v37 }
 0x6f4   :  { %v2300_v29 = vpop.f32.mrb[18].mxu0  ;;  %v1973_v18 = vmul.f32 %v1856_v62, %v1856_v62 }
 0x6f5   :  { %v1704_v20 = vpop.f32.mrb[19].mxu0  ;;  %v1859_v17 = vsub.f32 %v2300_v29, %v2330_v61  ;;  %v2008_v47 = vsel %vm46_vm0, %v1974_v63, 0.0  ;;  %v1751_v29 = vadd.s32 8, %v1750_v0 }
 0x6f6   :  { %1994 = vadd.xlane.f32.xlu1 %v1993_v27  ;;  %v1858_v40 = vsub.f32 %v1704_v20, %v3724_v35  ;;  %v2005_v33 = vsel %vm46_vm0, %v1973_v18, 0.0 }
 0x6f7   :  { %1917 = vadd.xlane.f32.xlu0 %v1916_v58  ;;  %v1976_v39 = vmul.f32 %v1859_v17, %v1859_v17  ;;  %vm1785_vm1 = vcmp.lt.s32.totalorder %v1751_v29, 12  ;;  %v1930_v58 = vmul.f32 0.0, %v1888_v30 }
 0x6f8   :  { %v2303_v9 = vpop.f32.mrb[20].mxu0  ;;  %v1975_v8 = vmul.f32 %v1858_v40, %v1858_v40  ;;  %v2171_v21 = vsel %vm1785_vm1, 1.0, %v3829_v44 }
 0x6f9   :  { %v1714_v26 = vpop.f32.mrb[21].mxu0  ;;  %v1861_v52 = vsub.f32 %v2303_v9, %v2332_v59  ;;  %v2014_v48 = vsel %vm46_vm0, %v1976_v39, 0.0 }
 0x6fa   :  { %2003 = vadd.xlane.f32.xlu1 %v2002_v41  ;;  %v1860_v28 = vsub.f32 %v1714_v26, %v2331_v2  ;;  %v2011_v61 = vsel %vm46_vm0, %v1975_v8, 0.0  ;;  %v1885_v2 = vpop.xlane.xlu0 %1884 }
 0x6fb   :  { %1920 = vadd.xlane.f32.xlu0 %v1919_v12  ;;  %v1978_v14 = vmul.f32 %v1861_v52, %v1861_v52  ;;  %v1929_v7 = vmul.f32 %v2171_v21, %v1885_v2 }
 0x6fc   :  { %v2306_v36 = vpop.f32.mrb[22].mxu0  ;;  %v1977_v24 = vmul.f32 %v1860_v28, %v1860_v28 }
 0x6fd   :  { %v1724_v46 = vpop.f32.mrb[23].mxu0  ;;  %v2020_v42 = vsel %vm46_vm0, %v1978_v14, 0.0  ;;  %v1863_v32 = vsub.f32 %v2306_v36, %v2334_v22 }
 0x6fe   :  { %2000 = vadd.xlane.f32.xlu1 %v1999_v34  ;;  %v1862_v1 = vsub.f32 %v1724_v46, %v2333_v43  ;;  %v2017_v54 = vsel %vm46_vm0, %v1977_v24, 0.0  ;;  %v1882_v60 = vpop.xlane.xlu0 %1881 }
 0x6ff   :  { %1923 = vadd.xlane.f32.xlu0 %v1922_v4  ;;  %v1980_v15 = vmul.f32 %v1863_v32, %v1863_v32  ;;  %v1944_v9 = vadd.f32 %v1929_v7, %v1882_v60 }
 0x700   :  { %v1979_v35 = vmul.f32 %v1862_v1, %v1862_v1 }
 0x701   :  { %v2026_v25 = vsel %vm46_vm0, %v1980_v15, 0.0  ;;  %v1945_v22 = vadd.f32 %v1944_v9, %v1930_v58 }
 0x702   :  { %2009 = vadd.xlane.f32.xlu1 %v2008_v47  ;;  %v2023_v19 = vsel %vm46_vm0, %v1979_v35, 0.0  ;;  %v1891_v31 = vpop.xlane.xlu0 %1890  ;;  %vm2066_vm0 = vcmp.eq.s32.totalorder %v2526_v3, 0 }
 0x703   :  { %1926 = vadd.xlane.f32.xlu0 %v1925_v56  ;;  %v1931_v26 = vmul.f32 0.0, %v1891_v31 }
 0x705   :  { %v1946_v36 = vadd.f32 %v1945_v22, %v1931_v26 }
 0x706   :  { %2006 = vadd.xlane.f32.xlu1 %v2005_v33  ;;  %v1894_v13 = vpop.xlane.xlu0 %1893 }
 0x707   :  { %v1932_v38 = vmul.f32 0.0, %v1894_v13 }
 0x709   :  { %v1947_v46 = vadd.f32 %v1946_v36, %v1932_v38 }
 0x70a   :  { %2015 = vadd.xlane.f32.xlu1 %v2014_v48  ;;  %v1897_v23 = vpop.xlane.xlu0 %1896 }
 0x70b   :  { %v1933_v63 = vmul.f32 0.0, %v1897_v23 }
 0x70d   :  { %v1948_v18 = vadd.f32 %v1947_v46, %v1933_v63 }
 0x70e   :  { %2012 = vadd.xlane.f32.xlu1 %v2011_v61  ;;  %v1900_v49 = vpop.xlane.xlu0 %1899 }
 0x70f   :  { %v1934_v34 = vmul.f32 0.0, %v1900_v49 }
 0x711   :  { %v1949_v39 = vadd.f32 %v1948_v18, %v1934_v34 }
 0x712   :  { %2021 = vadd.xlane.f32.xlu1 %v2020_v42  ;;  %v1903_v45 = vpop.xlane.xlu0 %1902 }
 0x713   :  { %v1935_v17 = vmul.f32 0.0, %v1903_v45 }
 0x715   :  { %v1950_v52 = vadd.f32 %v1949_v39, %v1935_v17 }
 0x716   :  { %2018 = vadd.xlane.f32.xlu1 %v2017_v54  ;;  %v1906_v59 = vpop.xlane.xlu0 %1905 }
 0x717   :  { %v1936_v40 = vmul.f32 0.0, %v1906_v59 }
 0x719   :  { %v1951_v61 = vadd.f32 %v1950_v52, %v1936_v40 }
 0x71a   :  { %2024 = vadd.xlane.f32.xlu1 %v2023_v19 }
 0x71e   :  { %2027 = vadd.xlane.f32.xlu1 %v2026_v25 }
 0x773   :  { %v1986_v55 = vpop.xlane.xlu1 %1985 }
 0x774   :  { %v1983_v6 = vpop.xlane.xlu0 %1982  ;;  %v2030_v5 = vmul.f32 %v2171_v21, %v1986_v55 }
 0x776   :  { %v2045_v57 = vadd.f32 %v2030_v5, %v1983_v6 }
 0x777   :  { %v1992_v10 = vpop.xlane.xlu1 %1991 }
 0x778   :  { %v1909_v51 = vpop.xlane.xlu0 %1908  ;;  %v2032_v44 = vmul.f32 0.0, %v1992_v10 }
 0x779   :  { %v1937_v48 = vmul.f32 0.0, %v1909_v51 }
 0x77b   :  { %v1989_v20 = vpop.xlane.xlu1 %1988  ;;  %v1952_v35 = vadd.f32 %v1951_v61, %v1937_v48 }
 0x77c   :  { %v1912_v27 = vpop.xlane.xlu0 %1911  ;;  %v2031_v41 = vmul.f32 0.0, %v1989_v20 }
 0x77d   :  { %v1938_v24 = vmul.f32 0.0, %v1912_v27 }
 0x77e   :  { %v2046_v62 = vadd.f32 %v2045_v57, %v2031_v41 }
 0x77f   :  { %v1998_v43 = vpop.xlane.xlu1 %1997  ;;  %v1953_v19 = vadd.f32 %v1952_v35, %v1938_v24 }
 0x780   :  { %v1915_v53 = vpop.xlane.xlu0 %1914  ;;  %v2047_v47 = vadd.f32 %v2046_v62, %v2032_v44  ;;  %v2034_v14 = vmul.f32 0.0, %v1998_v43 }
 0x781   :  { %v1939_v54 = vmul.f32 0.0, %v1915_v53 }
 0x783   :  { %v1995_v37 = vpop.xlane.xlu1 %1994  ;;  %v1954_v13 = vadd.f32 %v1953_v19, %v1939_v54 }
 0x784   :  { %v1918_v11 = vpop.xlane.xlu0 %1917  ;;  %v2033_v50 = vmul.f32 0.0, %v1995_v37 }
 0x785   :  { %v1940_v25 = vmul.f32 0.0, %v1918_v11 }
 0x786   :  { %v2048_v33 = vadd.f32 %v2047_v47, %v2033_v50 }
 0x787   :  { %v2004_v12 = vpop.xlane.xlu1 %2003  ;;  %v1955_v30 = vadd.f32 %v1954_v13, %v1940_v25 }
 0x788   :  { %v1921_v56 = vpop.xlane.xlu0 %1920  ;;  %v2049_v1 = vadd.f32 %v2048_v33, %v2034_v14  ;;  %v2036_v2 = vmul.f32 0.0, %v2004_v12 }
 0x789   :  { %v1941_v23 = vmul.f32 0.0, %v1921_v56 }
 0x78b   :  { %v2001_v4 = vpop.xlane.xlu1 %2000  ;;  %v1956_v55 = vadd.f32 %v1955_v30, %v1941_v23 }
 0x78c   :  { %v2035_v28 = vmul.f32 0.0, %v2001_v4  ;;  %v1924_v42 = vpop.xlane.xlu0 %1923 }
 0x78d   :  { %v1942_v59 = vmul.f32 0.0, %v1924_v42 }
 0x78e   :  { %v2050_v15 = vadd.f32 %v2049_v1, %v2035_v28 }
 0x78f   :  { %v2010_v8 = vpop.xlane.xlu1 %2009  ;;  %v1957_v51 = vadd.f32 %v1956_v55, %v1942_v59 }
 0x790   :  { %v2051_v49 = vadd.f32 %v2050_v15, %v2036_v2  ;;  %v1927_v45 = vpop.xlane.xlu0 %1926  ;;  %v2038_v6 = vmul.f32 0.0, %v2010_v8 }
 0x791   :  { %v1943_v29 = vmul.f32 0.0, %v1927_v45 }
 0x793   :  { %v2007_v32 = vpop.xlane.xlu1 %2006  ;;  %v1958_v21 = vadd.f32 %v1957_v51, %v1943_v29 }
 0x794   :  { %v2037_v60 = vmul.f32 0.0, %v2007_v32 }
 0x795   :  { %v1959_v58 = vrot.slane %v1958_v21, 4 }
 0x796   :  { %v2052_v16 = vadd.f32 %v2051_v49, %v2037_v60 }
 0x797   :  { %v2016_v31 = vpop.xlane.xlu1 %2015  ;;  %v1960_v22 = vadd.f32 %v1959_v58, %v1958_v21 }
 0x798   :  { %v2053_v20 = vadd.f32 %v2052_v16, %v2038_v6  ;;  %v2040_v7 = vmul.f32 0.0, %v2016_v31 }
 0x799   :  { %v1961_v12 = vrot.slane %v1960_v22, 2 }
 0x79b   :  { %v2013_v0 = vpop.xlane.xlu1 %2012  ;;  %v1962_v46 = vadd.f32 %v1961_v12, %v1960_v22 }
 0x79c   :  { %v2039_v10 = vmul.f32 0.0, %v2013_v0 }
 0x79d   :  { %v1963_v4 = vrot.slane %v1962_v46, 1 }
 0x79e   :  { %v2054_v43 = vadd.f32 %v2053_v20, %v2039_v10 }
 0x79f   :  { %v2022_v27 = vpop.xlane.xlu1 %2021  ;;  %v1964_v17 = vadd.f32 %v1963_v4, %v1962_v46 }
 0x7a0   :  { %v2055_v5 = vadd.f32 %v2054_v43, %v2040_v7  ;;  %v2042_v37 = vmul.f32 0.0, %v2022_v27 }
 0x7a1   :  { %v2067_v39 = vsel %vm2066_vm0, %v1964_v17, 0.0 }
 0x7a3   :  { %v2019_v53 = vpop.xlane.xlu1 %2018 }
 0x7a4   :  { %v2041_v9 = vmul.f32 0.0, %v2019_v53 }
 0x7a6   :  { %v2056_v26 = vadd.f32 %v2055_v5, %v2041_v9 }
 0x7a7   :  { %v2025_v41 = vpop.xlane.xlu1 %2024 }
 0x7a8   :  { %v2043_v38 = vmul.f32 0.0, %v2025_v41  ;;  %v2057_v57 = vadd.f32 %v2056_v26, %v2042_v37 }
 0x7aa   :  { %v2058_v36 = vadd.f32 %v2057_v57, %v2043_v38 }
 0x7ab   :  { %v2028_v11 = vpop.xlane.xlu1 %2027 }
 0x7ac   :  { %v2044_v63 = vmul.f32 0.0, %v2028_v11 }
 0x7ae   :  { %v2059_v62 = vadd.f32 %v2058_v36, %v2044_v63 }
 0x7b0   :  { %v2060_v34 = vrot.slane %v2059_v62, 4 }
 0x7b2   :  { %v2061_v44 = vadd.f32 %v2060_v34, %v2059_v62 }
 0x7b4   :  { %v2062_v50 = vrot.slane %v2061_v44, 2 }
 0x7b6   :  { %v2063_v18 = vadd.f32 %v2062_v50, %v2061_v44 }
 0x7b8   :  { %v2064_v47 = vrot.slane %v2063_v18, 1 }
 0x7ba   :  { %v2065_v56 = vadd.f32 %v2064_v47, %v2063_v18 }
 0x7bc   :  { %v2069_v40 = vsel %vm2068_vm6, %v2065_v56, 0.0 }
 0x7bd   :  { %v2070_v33 = vadd.f32 %v2069_v40, %v2067_v39 }
 0x7bf   :  { %2071 = vst [vmem:[#allocation2] sm:$0xff] %v2070_v33 }
 0x7c0   :  { %2346 = shalt.err (!%p2343_p4)
}
 0x7c1   :  { %s2347_s14 = scalar_lea.hbm %s3799_s5, 128 }
 0x7c2   :  { %p2348_p5 = scmp.ne.s32.totalorder %s3799_s5, %s2347_s14  ;;  %p2351_p6 = scmp.lt.u32.totalorder %s2347_s14, %s3799_s5 }
 0x7c4   :  { %p2353_p7 = pnand %p2351_p6, %p2348_p5 }
 0x7c6   :  { %2356 = shalt.err (!%p2353_p7)
}
 0x7c7   :  { %2083 = dma.vmem_to_hbm [thread:$0]  %s2081_s10, 128, %s3799_s5, [#allocation3]  }
 0x7c8   :  { %2357 = dma.done.wait [#allocation3], 128  }
 0x7c9   :  { %2358 = vsyncadd [#allocation3], 4294967168 }
 0x7ca   :  { %2089 = vsyncpa [#allocation3], 1 }

</bundles_post_ra>
